<compile_context>
chip_gen: v5e
topology: v5e:2x2
jax: 0.10.0
libtpu: 0.0.40
codegen_flags: <defaults>
</compile_context>

<pallas_src>
import math

import jax
import jax.numpy as jnp
from jax.experimental import pallas as pl
from jax.experimental.pallas import tpu as pltpu

STATE_DIM = 16
ACTION_DIM = 16
EMBED_DIM = 8
IN_DIM = STATE_DIM + ACTION_DIM
HIDDEN = 128            # every layer padded to 128 lanes
N_LAYERS = 6
B_TILE = 256            # batch tile: multiple of 8 (f32 sublane), 128 (v5e MXU), 256 (v6e/v7x MXU)

# (in_features, out_features) of each Linear, matching the nn.Sequential.
LAYER_DIMS = [
    (IN_DIM, 128),
    (128, 128),
    (128, 128),
    (128, 32),
    (32, 32),
    (32, EMBED_DIM),
]


def _mlp_softmax_kernel(state_ref, action_ref, w_ref, b_ref, out_ref):
    """One batch tile: 6-layer MLP (padded to 128 lanes) + masked softmax."""
    # ---- Layer 1: in-kernel concat via split weight rows ------------------
    w1 = w_ref[0].astype(jnp.float32)                       # (128, 128); rows >= 32 are zeros
    h = (jnp.dot(state_ref[...], w1[:STATE_DIM, :],
                 preferred_element_type=jnp.float32)
         + jnp.dot(action_ref[...], w1[STATE_DIM:IN_DIM, :],
                   preferred_element_type=jnp.float32)
         + b_ref[0])                                         # (B_TILE, 128)
    h = jnp.maximum(h, 0.0)

    # ---- Layers 2..5: Linear + ReLU (zero padding keeps results exact) ----
    for l in range(1, N_LAYERS - 1):
        h = jnp.dot(h, w_ref[l].astype(jnp.float32),
                    preferred_element_type=jnp.float32) + b_ref[l]
        h = jnp.maximum(h, 0.0)

    # ---- Final Linear + softmax over the first EMBED_DIM lanes ------------
    logits = jnp.dot(h, w_ref[N_LAYERS - 1].astype(jnp.float32),
                     preferred_element_type=jnp.float32) + b_ref[N_LAYERS - 1]
    lane = jax.lax.broadcasted_iota(jnp.int32, logits.shape, 1)
    logits = jnp.where(lane < EMBED_DIM, logits, -jnp.inf)   # mask padded lanes
    m = jnp.max(logits, axis=-1, keepdims=True)
    e = jnp.exp(logits - m)                                  # padded lanes -> exactly 0
    denom = jnp.sum(e, axis=-1, keepdims=True)
    out_ref[...] = e * pl.reciprocal(denom, approx=True)     # (B_TILE, 128), lane-dense store


def init_params(key):
    """Deterministic synthetic parameters (PyTorch-Linear-like uniform init)."""
    params = []
    for fan_in, fan_out in LAYER_DIMS:
        key, kw, kb = jax.random.split(key, 3)
        bound = 1.0 / math.sqrt(fan_in)
        w = jax.random.uniform(kw, (fan_in, fan_out), jnp.float32, -bound, bound)
        b = jax.random.uniform(kb, (fan_out,), jnp.float32, -bound, bound)
        params.append((w, b))
    return params


def pack_params(params):
    """Zero-pad every layer to 128x128 and pack into one bf16 weight slab + one f32 bias slab."""
    w_slab = jnp.zeros((N_LAYERS, HIDDEN, HIDDEN), jnp.float32)
    b_slab = jnp.zeros((N_LAYERS, 1, HIDDEN), jnp.float32)
    for l, (w, b) in enumerate(params):
        fi, fo = w.shape
        w_slab = w_slab.at[l, :fi, :fo].set(w)
        b_slab = b_slab.at[l, 0, :fo].set(b)
    return w_slab.astype(jnp.bfloat16), b_slab


def auxiliary_distribution_predictor(state, action, packed_params, *, b_tile=B_TILE):
    """state: (B, STATE_DIM) or (STATE_DIM,), action likewise -> probs (B, EMBED_DIM) or (EMBED_DIM,)."""
    w_slab, b_slab = packed_params

    squeeze = state.ndim == 1
    if squeeze:
        state, action = state[None, :], action[None, :]

    B = state.shape[0]
    n_tiles = pl.cdiv(B, b_tile)
    Bp = n_tiles * b_tile
    if Bp != B:
        state = jnp.pad(state, ((0, Bp - B), (0, 0)))
        action = jnp.pad(action, ((0, Bp - B), (0, 0)))

    out = pl.pallas_call(
        _mlp_softmax_kernel,
        out_shape=jax.ShapeDtypeStruct((Bp, HIDDEN), jnp.float32),
        grid_spec=pltpu.PrefetchScalarGridSpec(
            num_scalar_prefetch=0,
            grid=(n_tiles,),
            in_specs=[
                pl.BlockSpec((b_tile, STATE_DIM), lambda i: (i, 0)),
                pl.BlockSpec((b_tile, ACTION_DIM), lambda i: (i, 0)),
                # Constant block index -> parameter slabs DMA'd once, resident in VMEM.
                pl.BlockSpec((N_LAYERS, HIDDEN, HIDDEN), lambda i: (0, 0, 0)),
                pl.BlockSpec((N_LAYERS, 1, HIDDEN), lambda i: (0, 0, 0)),
            ],
            out_specs=pl.BlockSpec((b_tile, HIDDEN), lambda i: (i, 0)),
        ),
        compiler_params=pltpu.CompilerParams(
            dimension_semantics=("parallel",),
        ),
    )(state.astype(jnp.float32), action.astype(jnp.float32), w_slab, b_slab)

    probs = out[:B, :EMBED_DIM]
    return probs[0] if squeeze else probs


def _reference(state, action, params):
    """Pure-JAX reference using the same bf16-quantized weights, f32 math."""
    x = jnp.concatenate([state, action], axis=-1).astype(jnp.float32)
    if x.ndim == 1:
        x = x[None, :]
    for i, (w, b) in enumerate(params):
        wq = w.astype(jnp.bfloat16).astype(jnp.float32)
        x = x @ wq + b[None, :]
        if i < len(params) - 1:
            x = jnp.maximum(x, 0.0)
    return jax.nn.softmax(x, axis=-1)


if __name__ == "__main__":
    key = jax.random.PRNGKey(0)
    key, ks, ka, kp = jax.random.split(key, 4)

    B = 512  # two grid steps of B_TILE=256
    state = jax.random.normal(ks, (B, STATE_DIM), jnp.float32)
    action = jax.random.normal(ka, (B, ACTION_DIM), jnp.float32)
    params = init_params(kp)
    packed = pack_params(params)

    probs = auxiliary_distribution_predictor(state, action, packed)
    probs = jax.block_until_ready(probs)
    ref = _reference(state, action, params)

    assert probs.shape == (B, EMBED_DIM)
    assert jnp.allclose(jnp.sum(probs, axis=-1), 1.0, atol=1e-3)
    assert jnp.allclose(probs, ref, atol=1e-3, rtol=1e-3)

    # Original unbatched module signature (1-D state/action) still supported.
    p1 = auxiliary_distribution_predictor(state[0], action[0], packed)
    p1 = jax.block_until_ready(p1)
    assert p1.shape == (EMBED_DIM,)
    assert jnp.allclose(p1, ref[0], atol=1e-3, rtol=1e-3)

    print("KERNEL_OK")
</pallas_src>

<mosaic_0001>
module attributes {stable_mosaic.version = 11 : i64} {
  func.func @_mlp_softmax_kernel(%arg0: i32, %arg1: memref<256x16xf32, #tpu.memory_space<vmem>>, %arg2: memref<256x16xf32, #tpu.memory_space<vmem>>, %arg3: memref<6x128x128xbf16, #tpu.memory_space<vmem>>, %arg4: memref<6x1x128xf32, #tpu.memory_space<vmem>>, %arg5: memref<256x128xf32, #tpu.memory_space<vmem>>) attributes {dimension_semantics = [#tpu.dimension_semantics<parallel>], iteration_bounds = array<i64: 2>, scalar_prefetch = 0 : i64, scratch_operands = 0 : i64, tpu.core_type = #tpu.core_type<tc>, window_params = [{transform_indices = @transform_0, window_bounds = array<i64: 256, 16>}, {transform_indices = @transform_1, window_bounds = array<i64: 256, 16>}, {pipeline_mode = #tpu.pipeline_mode<synchronous>, transform_indices = @transform_2, window_bounds = array<i64: 6, 128, 128>}, {pipeline_mode = #tpu.pipeline_mode<synchronous>, transform_indices = @transform_3, window_bounds = array<i64: 6, 1, 128>}, {transform_indices = @transform_4, window_bounds = array<i64: 256, 128>}]} {
    %c0 = arith.constant 0 : index
    %c0_0 = arith.constant 0 : index
    %c0_1 = arith.constant 0 : index
    %0 = vector.load %arg3[%c0, %c0_0, %c0_1] : memref<6x128x128xbf16, #tpu.memory_space<vmem>>, vector<1x128x128xbf16>
    %1 = vector.shape_cast %0 : vector<1x128x128xbf16> to vector<128x128xbf16>
    %2 = arith.extf %1 : vector<128x128xbf16> to vector<128x128xf32>
    %c0_2 = arith.constant 0 : index
    %c0_3 = arith.constant 0 : index
    %3 = vector.load %arg1[%c0_2, %c0_3] : memref<256x16xf32, #tpu.memory_space<vmem>>, vector<256x16xf32>
    %4 = vector.extract_strided_slice %2 {offsets = [0, 0], sizes = [16, 128], strides = [1, 1]} : vector<128x128xf32> to vector<16x128xf32>
    %cst = arith.constant dense<0.000000e+00> : vector<256x128xf32>
    %5 = tpu.matmul %3, %4, %cst {dimension_numbers = #tpu.dot_dimension_numbers<[1], [0], [0], [1], [0, 0, 1, 1], [], []>} : vector<256x16xf32>, vector<16x128xf32>, vector<256x128xf32> -> vector<256x128xf32>
    %c0_4 = arith.constant 0 : index
    %c0_5 = arith.constant 0 : index
    %6 = vector.load %arg2[%c0_4, %c0_5] : memref<256x16xf32, #tpu.memory_space<vmem>>, vector<256x16xf32>
    %7 = vector.extract_strided_slice %2 {offsets = [16, 0], sizes = [16, 128], strides = [1, 1]} : vector<128x128xf32> to vector<16x128xf32>
    %cst_6 = arith.constant dense<0.000000e+00> : vector<256x128xf32>
    %8 = tpu.matmul %6, %7, %cst_6 {dimension_numbers = #tpu.dot_dimension_numbers<[1], [0], [0], [1], [0, 0, 1, 1], [], []>} : vector<256x16xf32>, vector<16x128xf32>, vector<256x128xf32> -> vector<256x128xf32>
    %9 = arith.addf %5, %8 : vector<256x128xf32>
    %c0_7 = arith.constant 0 : index
    %c0_8 = arith.constant 0 : index
    %c0_9 = arith.constant 0 : index
    %10 = vector.load %arg4[%c0_7, %c0_8, %c0_9] : memref<6x1x128xf32, #tpu.memory_space<vmem>>, vector<1x1x128xf32>
    %11 = vector.shape_cast %10 : vector<1x1x128xf32> to vector<1x128xf32>
    %12 = vector.broadcast %11 : vector<1x128xf32> to vector<256x128xf32>
    %13 = arith.addf %9, %12 : vector<256x128xf32>
    %cst_10 = arith.constant 0.000000e+00 : f32
    %14 = vector.broadcast %cst_10 : f32 to vector<256x128xf32>
    %15 = arith.maximumf %13, %14 : vector<256x128xf32>
    %c1 = arith.constant 1 : index
    %c0_11 = arith.constant 0 : index
    %c0_12 = arith.constant 0 : index
    %16 = vector.load %arg3[%c1, %c0_11, %c0_12] : memref<6x128x128xbf16, #tpu.memory_space<vmem>>, vector<1x128x128xbf16>
    %17 = vector.shape_cast %16 : vector<1x128x128xbf16> to vector<128x128xbf16>
    %18 = arith.extf %17 : vector<128x128xbf16> to vector<128x128xf32>
    %cst_13 = arith.constant dense<0.000000e+00> : vector<256x128xf32>
    %19 = tpu.matmul %15, %18, %cst_13 {dimension_numbers = #tpu.dot_dimension_numbers<[1], [0], [0], [1], [0, 0, 1, 1], [], []>} : vector<256x128xf32>, vector<128x128xf32>, vector<256x128xf32> -> vector<256x128xf32>
    %c1_14 = arith.constant 1 : index
    %c0_15 = arith.constant 0 : index
    %c0_16 = arith.constant 0 : index
    %20 = vector.load %arg4[%c1_14, %c0_15, %c0_16] : memref<6x1x128xf32, #tpu.memory_space<vmem>>, vector<1x1x128xf32>
    %21 = vector.shape_cast %20 : vector<1x1x128xf32> to vector<1x128xf32>
    %22 = vector.broadcast %21 : vector<1x128xf32> to vector<256x128xf32>
    %23 = arith.addf %19, %22 : vector<256x128xf32>
    %cst_17 = arith.constant 0.000000e+00 : f32
    %24 = vector.broadcast %cst_17 : f32 to vector<256x128xf32>
    %25 = arith.maximumf %23, %24 : vector<256x128xf32>
    %c2 = arith.constant 2 : index
    %c0_18 = arith.constant 0 : index
    %c0_19 = arith.constant 0 : index
    %26 = vector.load %arg3[%c2, %c0_18, %c0_19] : memref<6x128x128xbf16, #tpu.memory_space<vmem>>, vector<1x128x128xbf16>
    %27 = vector.shape_cast %26 : vector<1x128x128xbf16> to vector<128x128xbf16>
    %28 = arith.extf %27 : vector<128x128xbf16> to vector<128x128xf32>
    %cst_20 = arith.constant dense<0.000000e+00> : vector<256x128xf32>
    %29 = tpu.matmul %25, %28, %cst_20 {dimension_numbers = #tpu.dot_dimension_numbers<[1], [0], [0], [1], [0, 0, 1, 1], [], []>} : vector<256x128xf32>, vector<128x128xf32>, vector<256x128xf32> -> vector<256x128xf32>
    %c2_21 = arith.constant 2 : index
    %c0_22 = arith.constant 0 : index
    %c0_23 = arith.constant 0 : index
    %30 = vector.load %arg4[%c2_21, %c0_22, %c0_23] : memref<6x1x128xf32, #tpu.memory_space<vmem>>, vector<1x1x128xf32>
    %31 = vector.shape_cast %30 : vector<1x1x128xf32> to vector<1x128xf32>
    %32 = vector.broadcast %31 : vector<1x128xf32> to vector<256x128xf32>
    %33 = arith.addf %29, %32 : vector<256x128xf32>
    %cst_24 = arith.constant 0.000000e+00 : f32
    %34 = vector.broadcast %cst_24 : f32 to vector<256x128xf32>
    %35 = arith.maximumf %33, %34 : vector<256x128xf32>
    %c3 = arith.constant 3 : index
    %c0_25 = arith.constant 0 : index
    %c0_26 = arith.constant 0 : index
    %36 = vector.load %arg3[%c3, %c0_25, %c0_26] : memref<6x128x128xbf16, #tpu.memory_space<vmem>>, vector<1x128x128xbf16>
    %37 = vector.shape_cast %36 : vector<1x128x128xbf16> to vector<128x128xbf16>
    %38 = arith.extf %37 : vector<128x128xbf16> to vector<128x128xf32>
    %cst_27 = arith.constant dense<0.000000e+00> : vector<256x128xf32>
    %39 = tpu.matmul %35, %38, %cst_27 {dimension_numbers = #tpu.dot_dimension_numbers<[1], [0], [0], [1], [0, 0, 1, 1], [], []>} : vector<256x128xf32>, vector<128x128xf32>, vector<256x128xf32> -> vector<256x128xf32>
    %c3_28 = arith.constant 3 : index
    %c0_29 = arith.constant 0 : index
    %c0_30 = arith.constant 0 : index
    %40 = vector.load %arg4[%c3_28, %c0_29, %c0_30] : memref<6x1x128xf32, #tpu.memory_space<vmem>>, vector<1x1x128xf32>
    %41 = vector.shape_cast %40 : vector<1x1x128xf32> to vector<1x128xf32>
    %42 = vector.broadcast %41 : vector<1x128xf32> to vector<256x128xf32>
    %43 = arith.addf %39, %42 : vector<256x128xf32>
    %cst_31 = arith.constant 0.000000e+00 : f32
    %44 = vector.broadcast %cst_31 : f32 to vector<256x128xf32>
    %45 = arith.maximumf %43, %44 : vector<256x128xf32>
    %c4 = arith.constant 4 : index
    %c0_32 = arith.constant 0 : index
    %c0_33 = arith.constant 0 : index
    %46 = vector.load %arg3[%c4, %c0_32, %c0_33] : memref<6x128x128xbf16, #tpu.memory_space<vmem>>, vector<1x128x128xbf16>
    %47 = vector.shape_cast %46 : vector<1x128x128xbf16> to vector<128x128xbf16>
    %48 = arith.extf %47 : vector<128x128xbf16> to vector<128x128xf32>
    %cst_34 = arith.constant dense<0.000000e+00> : vector<256x128xf32>
    %49 = tpu.matmul %45, %48, %cst_34 {dimension_numbers = #tpu.dot_dimension_numbers<[1], [0], [0], [1], [0, 0, 1, 1], [], []>} : vector<256x128xf32>, vector<128x128xf32>, vector<256x128xf32> -> vector<256x128xf32>
    %c4_35 = arith.constant 4 : index
    %c0_36 = arith.constant 0 : index
    %c0_37 = arith.constant 0 : index
    %50 = vector.load %arg4[%c4_35, %c0_36, %c0_37] : memref<6x1x128xf32, #tpu.memory_space<vmem>>, vector<1x1x128xf32>
    %51 = vector.shape_cast %50 : vector<1x1x128xf32> to vector<1x128xf32>
    %52 = vector.broadcast %51 : vector<1x128xf32> to vector<256x128xf32>
    %53 = arith.addf %49, %52 : vector<256x128xf32>
    %cst_38 = arith.constant 0.000000e+00 : f32
    %54 = vector.broadcast %cst_38 : f32 to vector<256x128xf32>
    %55 = arith.maximumf %53, %54 : vector<256x128xf32>
    %c5 = arith.constant 5 : index
    %c0_39 = arith.constant 0 : index
    %c0_40 = arith.constant 0 : index
    %56 = vector.load %arg3[%c5, %c0_39, %c0_40] : memref<6x128x128xbf16, #tpu.memory_space<vmem>>, vector<1x128x128xbf16>
    %57 = vector.shape_cast %56 : vector<1x128x128xbf16> to vector<128x128xbf16>
    %58 = arith.extf %57 : vector<128x128xbf16> to vector<128x128xf32>
    %cst_41 = arith.constant dense<0.000000e+00> : vector<256x128xf32>
    %59 = tpu.matmul %55, %58, %cst_41 {dimension_numbers = #tpu.dot_dimension_numbers<[1], [0], [0], [1], [0, 0, 1, 1], [], []>} : vector<256x128xf32>, vector<128x128xf32>, vector<256x128xf32> -> vector<256x128xf32>
    %c5_42 = arith.constant 5 : index
    %c0_43 = arith.constant 0 : index
    %c0_44 = arith.constant 0 : index
    %60 = vector.load %arg4[%c5_42, %c0_43, %c0_44] : memref<6x1x128xf32, #tpu.memory_space<vmem>>, vector<1x1x128xf32>
    %61 = vector.shape_cast %60 : vector<1x1x128xf32> to vector<1x128xf32>
    %62 = vector.broadcast %61 : vector<1x128xf32> to vector<256x128xf32>
    %63 = arith.addf %59, %62 : vector<256x128xf32>
    %64 = tpu.iota {dimensions = array<i32: 1>} : vector<256x128xi32>
    %c8_i32 = arith.constant 8 : i32
    %65 = vector.broadcast %c8_i32 : i32 to vector<256x128xi32>
    %66 = arith.cmpi slt, %64, %65 : vector<256x128xi32>
    %cst_45 = arith.constant 0xFF800000 : f32
    %67 = vector.broadcast %cst_45 : f32 to vector<256x128xf32>
    %68 = arith.select %66, %63, %67 : vector<256x128xi1>, vector<256x128xf32>
    %cst_46 = arith.constant dense<0xFF800000> : vector<256xf32>
    %69 = vector.multi_reduction <maximumf>, %68, %cst_46 [1] : vector<256x128xf32> to vector<256xf32>
    %70 = vector.shape_cast %69 : vector<256xf32> to vector<256x1xf32>
    %71 = vector.broadcast %70 : vector<256x1xf32> to vector<256x128xf32>
    %72 = arith.subf %68, %71 : vector<256x128xf32>
    %73 = math.exp %72 : vector<256x128xf32>
    %cst_47 = arith.constant dense<0.000000e+00> : vector<256xf32>
    %74 = vector.multi_reduction <add>, %73, %cst_47 [1] : vector<256x128xf32> to vector<256xf32>
    %75 = vector.shape_cast %74 : vector<256xf32> to vector<256x1xf32>
    %76 = tpu.reciprocal %75 {approx = true} : vector<256x1xf32> -> vector<256x1xf32>
    %77 = vector.broadcast %76 : vector<256x1xf32> to vector<256x128xf32>
    %78 = arith.mulf %73, %77 : vector<256x128xf32>
    %c0_48 = arith.constant 0 : index
    %c0_49 = arith.constant 0 : index
    %79 = vector.load %arg5[%c0_48, %c0_49] : memref<256x128xf32, #tpu.memory_space<vmem>>, vector<256x128xf32>
    tpu.vector_store %arg5[%c0_48, %c0_49], %78 {strides = array<i32>} : memref<256x128xf32, #tpu.memory_space<vmem>>, vector<256x128xf32>,
    return
  }
  func.func @transform_0(%arg0: i32) -> (i32, i32) {
    %c0_i32 = arith.constant 0 : i32
    %c0_i32_0 = arith.constant 0 : i32
    return %arg0, %c0_i32 : i32, i32
  }
  func.func @transform_1(%arg0: i32) -> (i32, i32) {
    %c0_i32 = arith.constant 0 : i32
    %c0_i32_0 = arith.constant 0 : i32
    return %arg0, %c0_i32 : i32, i32
  }
  func.func @transform_2(%arg0: i32) -> (i32, i32, i32) {
    %c0_i32 = arith.constant 0 : i32
    %c0_i32_0 = arith.constant 0 : i32
    %c0_i32_1 = arith.constant 0 : i32
    %c0_i32_2 = arith.constant 0 : i32
    return %c0_i32, %c0_i32_0, %c0_i32_1 : i32, i32, i32
  }
  func.func @transform_3(%arg0: i32) -> (i32, i32, i32) {
    %c0_i32 = arith.constant 0 : i32
    %c0_i32_0 = arith.constant 0 : i32
    %c0_i32_1 = arith.constant 0 : i32
    %c0_i32_2 = arith.constant 0 : i32
    return %c0_i32, %c0_i32_0, %c0_i32_1 : i32, i32, i32
  }
  func.func @transform_4(%arg0: i32) -> (i32, i32) {
    %c0_i32 = arith.constant 0 : i32
    %c0_i32_0 = arith.constant 0 : i32
    return %arg0, %c0_i32 : i32, i32
  }
}

</mosaic_0001>

<bundles_post_ra>
// kernel: tpu_custom_call.1
= control target key start
LH: loop header
LB: loop body
LE: loop exit
PB: predicated region body
PF: predicated region fallthrough
CT: control target
= control target key end

     0   :  { %9 = vsyncpa [#allocation3], 0  ;;  %s3760_s0 = inlined_call_operand.vmem [shape: f32[512,16], index: 0, kind: input, shape index: {}]   ;;  %s3761_s1 = inlined_call_operand.vmem [shape: f32[512,16], index: 1, kind: input, shape index: {}]   ;;  %s3762_s2 = inlined_call_operand.vmem [shape: bf16[6,128,128], index: 2, kind: input, shape index: {}]   ;;  %s3763_s3 = inlined_call_operand.vmem [shape: f32[6,1,128], index: 3, kind: input, shape index: {}]   ;;  %s3764_s4 = inlined_call_operand.hbm [shape: f32[512,128], index: 4, kind: output, shape index: {}]  }
   0x1   :  { %11 = vsyncpa [#allocation3 + $0x1], 0  ;;  %s2783_s15 = smov 0   ;;  %s2785_s16 = smov 0  }
   0x2   :  { %s2787_s17 = smov 0   ;;  %s2789_s18 = smov 0  }
   0x3 LB: > { %s2804_s19 = sadd.s32 4294967295, %s2754_s18   ;;  %s2108_s20 = sadd.s32 4294967294, %s2754_s18   ;;  %s2754_s18 = sphi %s2789_s18, %s3770_s18   ;;  %s2750_s17 = sphi %s2787_s17, %s3769_s17   ;;  %s2746_s16 = sphi %s2785_s16, %s3768_s16   ;;  %s2742_s15 = sphi %s2783_s15, %s3767_s15  }
   0x4   : > { %s2808_s21 = sadd.s32 1, %s2754_s18   ;;  %s118_s22 = sadd.s32 1, %s2750_s17 }
   0x5   : > { %s115_s23 = ssub.s32 %s2754_s18, %s2808_s21  ;;  %p128_p0 = scmp.ne.s32.totalorder %s2750_s17, %s2746_s16 }
   0x6   : > { %p116_p1 = scmp.eq.s32.totalorder %s115_s23, 0  ;;  %p129_p2 = scmp.eq.s32.totalorder %s2804_s19, 1 }
   0x7   : > { %p134_p3 = scmp.ne.s32.totalorder %s2746_s16, %s2742_s15  ;;  %p135_p4 = scmp.eq.s32.totalorder %s2108_s20, 1 }
   0x8   : > { %s2819_s24 = scalar_select %p116_p1, %s2750_s17, %s118_s22  }
   0x9   : > { %p2821_p5 = por %p129_p2, %p128_p0  ;;  %p2825_p6 = por %p135_p4, %p134_p3 }
   0xa   : > { %p2111_p7 = scmp.ge.s32.totalorder %s2754_s18, 1  ;;  %p177_p8 = scmp.lt.s32.totalorder %s2754_s18, 3 }
   0xc   : > { %p178_p9 = pnand %p2111_p7, %p177_p8 }
   0xd   : > { %s2113_s5 = sshll.u32 (!%p178_p9), %s2804_s19, 5  ;;  %s205_s29 = sand.u32 (!%p178_p9), 1, %s2746_s16  }
   0xe   : > { %181 = sbr.rel (%p178_p9) target bundleno = 1449 (0x5a9), region = 36  ;;  %p209_p10 = scmp.lt.s32.totalorder (!%p178_p9), %s2113_s5, 63 }
   0xf   : > { %s2112_s30 = sshll.u32 (!%p178_p9), %s205_s29, 8  ;;  %s2712_s22 = scalar_lea.hbm (!%p178_p9), %s3764_s4, 512 }
  0x13   : > { %v2440_v0 = vld [vmem:[%s3762_s2 + $0x8] sm:$0xff]   ;;  %v2273_v1 = vld [vmem:[%s3762_s2] sm:$0xff]   ;;  %s3772_s5 = smov (!%p209_p10, %s2113_s5), 63  ;;  %vm293_vm0 = vcmask 130048   ;;  %v2448_v27 = vld [vmem:[%s3762_s2 + $0x78] sm:$0xff]  }
  0x14   : > { %v2279_v2 = vunpack.c.h.bf16 %v2440_v0  ;;  %v2275_v3 = vunpack.c.h.bf16 %v2273_v1  ;;  %v2278_v4 = vunpack.c.l.bf16 %v2440_v0  ;;  %v2274_v5 = vunpack.c.l.bf16 %v2273_v1  ;;  %s2114_s6 = sshll.u32 %s3772_s5, 3  ;;  %v2447_v32 = vld [vmem:[%s3762_s2 + $0x70] sm:$0xff]   ;;  %v2446_v36 = vld [vmem:[%s3762_s2 + $0x68] sm:$0xff]   ;;  %v2445_v41 = vld [vmem:[%s3762_s2 + $0x60] sm:$0xff]   ;;  %s3592_s5 = scalar_lea.vmem [#allocation2], %s2112_s30 }
  0x15   : > { %s2841_s9 = scalar_lea.vmem %s3761_s1, %s2114_s6  ;;  %s2846_s12 = scalar_lea.vmem %s3760_s0, %s2114_s6  ;;  %v2311_v28 = vunpack.c.h.bf16 %v2448_v27  ;;  %v2310_v29 = vunpack.c.l.bf16 %v2448_v27  ;;  %v2307_v33 = vunpack.c.h.bf16 %v2447_v32  ;;  %v2306_v35 = vunpack.c.l.bf16 %v2447_v32  ;;  %v2444_v45 = vld [vmem:[%s3762_s2 + $0x58] sm:$0xff]   ;;  %v2443_v50 = vld [vmem:[%s3762_s2 + $0x50] sm:$0xff]   ;;  %v2442_v54 = vld [vmem:[%s3762_s2 + $0x48] sm:$0xff]  }
  0x16   : > { %404 = vmatpush.msra.mxu0 %v2279_v2  ;;  %613 = vmatpush.msra.mxu1 %v2275_v3  ;;  %v261_v6 = vld [vmem:[%s2841_s9] sm:$0xff]  ;;  %v262_v8 = vld [vmem:[%s2841_s9 + $0x8] sm:$0xff]  ;;  %v263_v10 = vld [vmem:[%s2841_s9 + $0x10] sm:$0xff]  ;;  %v2303_v37 = vunpack.c.h.bf16 %v2446_v36  ;;  %v2302_v38 = vunpack.c.l.bf16 %v2446_v36  ;;  %v2299_v42 = vunpack.c.h.bf16 %v2445_v41  ;;  %v2298_v44 = vunpack.c.l.bf16 %v2445_v41  ;;  %s2271_s6 = sshll.u32 %s2804_s19, 8  ;;  %s2031_s11 = sshll.u32 %s3592_s5, 4  ;;  %s2032_s11 = int_to_ptr.vmem [resolvable:$true] %s2031_s11 }
  0x17   : > { %2481 = vmatpush.msra.mxu3 %v2279_v2  ;;  %v229_v7 = vld [vmem:[%s2846_s12] sm:$0xff]  ;;  %v230_v9 = vld [vmem:[%s2846_s12 + $0x8] sm:$0xff]  ;;  %v231_v11 = vld [vmem:[%s2846_s12 + $0x10] sm:$0xff]  ;;  %818 = vmatpush.msra.mxu2 %v2311_v28  ;;  %v2295_v46 = vunpack.c.h.bf16 %v2444_v45  ;;  %v2294_v47 = vunpack.c.l.bf16 %v2444_v45  ;;  %v2291_v51 = vunpack.c.h.bf16 %v2443_v50  ;;  %v2290_v53 = vunpack.c.l.bf16 %v2443_v50  ;;  %s2030_s10 = scalar_lea.hbm %s3764_s4, %s2271_s6  ;;  %s2019_s19 = scalar_lea.sflag [#allocation3], %s205_s29 }
  0x18   : > { %405 = vmatpush.msra.mxu0 %v2278_v4  ;;  %614 = vmatpush.msra.mxu1 %v2274_v5  ;;  %v264_v12 = vld [vmem:[%s2841_s9 + $0x18] sm:$0xff]  ;;  %v265_v14 = vld [vmem:[%s2841_s9 + $0x20] sm:$0xff]  ;;  %v266_v16 = vld [vmem:[%s2841_s9 + $0x28] sm:$0xff]  ;;  %v2287_v55 = vunpack.c.h.bf16 %v2442_v54  ;;  %v2286_v58 = vunpack.c.l.bf16 %v2442_v54  ;;  %s2033_s13 = sshll.u32 %s2030_s10, 4  ;;  %s2034_s13 = int_to_ptr.hbm [resolvable:$true] %s2033_s13 }
  0x19   : > { %2482 = vmatpush.msra.mxu3 %v2278_v4  ;;  %2117 = vmatmul.msk.f32.vlgmr.msra.gmra.mxu0 %vm293_vm0, %v261_v6  ;;  %v232_v13 = vld [vmem:[%s2846_s12 + $0x18] sm:$0xff]  ;;  %v233_v15 = vld [vmem:[%s2846_s12 + $0x20] sm:$0xff]  ;;  %v234_v17 = vld [vmem:[%s2846_s12 + $0x28] sm:$0xff]  ;;  %s2706_s14 = sshra.s32 %s2034_s13, 4  ;;  %s2707_s14 = int_to_ptr.hbm [resolvable:$true] %s2706_s14 }
  0x1a   : > { %2149 = vmatmul.msk.f32.vlgmr.msra.gmra.mxu1 %vm293_vm0, %v229_v7  ;;  %v267_v18 = vld [vmem:[%s2841_s9 + $0x30] sm:$0xff]  ;;  %v286_v20 = vld [vmem:[%s2841_s9 + $0xc8] sm:$0xff]  ;;  %v268_v21 = vld [vmem:[%s2841_s9 + $0x38] sm:$0xff]  ;;  %819 = vmatpush.msra.mxu2 %v2310_v29  ;;  %s2708_s20 = scalar_lea.hbm %s2707_s14, 256  ;;  %p2713_p0 = scmp.lt.s32.totalorder %s2707_s14, %s3764_s4 }
  0x1b   : > { %2483 = vmatpush.msrb.mxu3 %v2275_v3  ;;  %v235_v19 = vld [vmem:[%s2846_s12 + $0x30] sm:$0xff]  ;;  %v236_v22 = vld [vmem:[%s2846_s12 + $0x38] sm:$0xff]  ;;  %v269_v24 = vld [vmem:[%s2841_s9 + $0x40] sm:$0xff]  ;;  %p2709_p11 = scmp.ne.s32.totalorder %s2707_s14, %s2708_s20  ;;  %p2714_p1 = scmp.lt.s32.totalorder %s2712_s22, %s2708_s20 }
  0x1c   : > { %2142 = vmatmul.msk.f32.vlgmr.msra.gmra.mxu3 %vm293_vm0, %v286_v20  ;;  %v287_v23 = vld [vmem:[%s2841_s9 + $0xd0] sm:$0xff]  ;;  %v237_v25 = vld [vmem:[%s2846_s12 + $0x40] sm:$0xff]  ;;  %v288_v26 = vld [vmem:[%s2841_s9 + $0xd8] sm:$0xff]  ;;  %820 = vmatpush.msra.mxu2 %v2307_v33 }
  0x1d   : > { %2484 = vmatpush.msrb.mxu3 %v2274_v5  ;;  %v270_v30 = vld [vmem:[%s2841_s9 + $0x48] sm:$0xff]  ;;  %v289_v34 = vld [vmem:[%s2841_s9 + $0xe0] sm:$0xff]  ;;  %v271_v39 = vld [vmem:[%s2841_s9 + $0x50] sm:$0xff]  ;;  %p2710_p12 = pnand %p2709_p11, %p2821_p5  ;;  %p2715_p2 = por %p2714_p1, %p2713_p0 }
  0x1e   : > { %v238_v31 = vld [vmem:[%s2846_s12 + $0x48] sm:$0xff]  ;;  %821 = vmatpush.msra.mxu2 %v2306_v35  ;;  %v239_v40 = vld [vmem:[%s2846_s12 + $0x50] sm:$0xff]  ;;  %v272_v48 = vld [vmem:[%s2841_s9 + $0x58] sm:$0xff] }
  0x1f   : > { %2485 = vmatpush.msra.mxu3 %v2311_v28  ;;  %v290_v43 = vld [vmem:[%s2841_s9 + $0xe8] sm:$0xff]  ;;  %v240_v49 = vld [vmem:[%s2846_s12 + $0x58] sm:$0xff]  ;;  %v291_v52 = vld [vmem:[%s2841_s9 + $0xf0] sm:$0xff]  ;;  %p2711_p13 = pneg %p2710_p12 }
  0x20   : > { %822 = vmatpush.msra.mxu2 %v2303_v37  ;;  %v273_v56 = vld [vmem:[%s2841_s9 + $0x60] sm:$0xff]  ;;  %v292_v61 = vld [vmem:[%s2841_s9 + $0xf8] sm:$0xff]  ;;  %v274_v63 = vld [vmem:[%s2841_s9 + $0x68] sm:$0xff] }
  0x21   : > { %2118 = vmatmul.msk.f32.gmra.mxu0 %vm293_vm0, %v262_v8  ;;  %2486 = vmatpush.msra.mxu3 %v2310_v29  ;;  %v241_v57 = vld [vmem:[%s2846_s12 + $0x60] sm:$0xff]  ;;  %v242_v0 = vld [vmem:[%s2846_s12 + $0x68] sm:$0xff]  ;;  %v275_v2 = vld [vmem:[%s2841_s9 + $0x70] sm:$0xff]  ;;  %p2716_p3 = pnand %p2715_p2, %p2711_p13 }
  0x22   : > { %2150 = vmatmul.msk.f32.gmra.mxu1 %vm293_vm0, %v230_v9  ;;  %823 = vmatpush.msra.mxu2 %v2302_v38  ;;  %v2441_v59 = vld [vmem:[%s3762_s2 + $0x40] sm:$0xff]   ;;  %v254_v1 = vld [vmem:[%s2846_s12 + $0xc8] sm:$0xff]  ;;  %v243_v3 = vld [vmem:[%s2846_s12 + $0x70] sm:$0xff] }
  0x23   : > { %2487 = vmatpush.msra.mxu3 %v2307_v33  ;;  %v2283_v60 = vunpack.c.h.bf16 %v2441_v59  ;;  %v2282_v62 = vunpack.c.l.bf16 %v2441_v59  ;;  %v255_v4 = vld [vmem:[%s2846_s12 + $0xd0] sm:$0xff]  ;;  %v276_v5 = vld [vmem:[%s2841_s9 + $0x78] sm:$0xff]  ;;  %v2959_v8 = vld [vmem:[%s3763_s3] ss:$0 sm:$0xff] }
  0x24   : > { %2143 = vmatmul.msk.f32.gmra.mxu3 %vm293_vm0, %v287_v23  ;;  %824 = vmatpush.msra.mxu2 %v2299_v42  ;;  %v244_v6 = vld [vmem:[%s2846_s12 + $0x78] sm:$0xff]  ;;  %v246_v20 = vld [vmem:[%s2846_s12 + $0x88] sm:$0xff]  ;;  %v279_v27 = vld [vmem:[%s2841_s9 + $0x90] sm:$0xff] }
  0x25   : > { %2488 = vmatpush.msra.mxu3 %v2306_v35  ;;  %v256_v7 = vld [vmem:[%s2846_s12 + $0xd8] sm:$0xff]  ;;  %v258_v23 = vld [vmem:[%s2846_s12 + $0xe8] sm:$0xff]  ;;  %v247_v28 = vld [vmem:[%s2846_s12 + $0x90] sm:$0xff] }
  0x26   : > { %825 = vmatpush.msra.mxu2 %v2298_v44  ;;  %v280_v35 = vld [vmem:[%s2841_s9 + $0x98] sm:$0xff]  ;;  %v282_v50 = vld [vmem:[%s2841_s9 + $0xa8] sm:$0xff] }
  0x27   : > { %2489 = vmatpush.msra.mxu3 %v2303_v37  ;;  %v248_v36 = vld [vmem:[%s2846_s12 + $0x98] sm:$0xff] }
  0x28   : > { %826 = vmatpush.msra.mxu2 %v2295_v46 }
  0x29   : > { %2119 = vmatmul.msk.f32.gmra.mxu0 %vm293_vm0, %v263_v10  ;;  %2490 = vmatpush.msra.mxu3 %v2302_v38 }
  0x2a   : > { %2151 = vmatmul.msk.f32.gmra.mxu1 %vm293_vm0, %v231_v11  ;;  %827 = vmatpush.msra.mxu2 %v2294_v47  ;;  %v277_v11 = vld [vmem:[%s2841_s9 + $0x80] sm:$0xff] }
  0x2b   : > { %2491 = vmatpush.msra.mxu3 %v2299_v42 }
  0x2c   : > { %2144 = vmatmul.msk.f32.gmra.mxu3 %vm293_vm0, %v288_v26  ;;  %828 = vmatpush.msra.mxu2 %v2291_v51 }
  0x2d   : > { %2492 = vmatpush.msra.mxu3 %v2298_v44  ;;  %v249_v44 = vld [vmem:[%s2846_s12 + $0xa0] sm:$0xff] }
  0x2e   : > { %829 = vmatpush.msra.mxu2 %v2290_v53 }
  0x2f   : > { %2493 = vmatpush.msra.mxu3 %v2295_v46 }
  0x30   : > { %830 = vmatpush.msra.mxu2 %v2287_v55 }
  0x31   : > { %2120 = vmatmul.msk.f32.gmra.mxu0 %vm293_vm0, %v264_v12  ;;  %2494 = vmatpush.msra.mxu3 %v2294_v47  ;;  %v245_v12 = vld [vmem:[%s2846_s12 + $0x80] sm:$0xff] }
  0x32   : > { %2152 = vmatmul.msk.f32.gmra.mxu1 %vm293_vm0, %v232_v13  ;;  %831 = vmatpush.msra.mxu2 %v2286_v58 }
  0x33   : > { %2495 = vmatpush.msra.mxu3 %v2291_v51  ;;  %v250_v51 = vld [vmem:[%s2846_s12 + $0xa8] sm:$0xff] }
  0x34   : > { %2145 = vmatmul.msk.f32.gmra.mxu3 %vm293_vm0, %v289_v34  ;;  %832 = vmatpush.msra.mxu2 %v2283_v60 }
  0x35   : > { %2496 = vmatpush.msra.mxu3 %v2290_v53 }
  0x36   : > { %833 = vmatpush.msra.mxu2 %v2282_v62 }
  0x37   : > { %2497 = vmatpush.msra.mxu3 %v2287_v55 }
  0x39   : > { %2121 = vmatmul.msk.f32.gmra.mxu0 %vm293_vm0, %v265_v14  ;;  %2498 = vmatpush.msra.mxu3 %v2286_v58  ;;  %v251_v58 = vld [vmem:[%s2846_s12 + $0xb0] sm:$0xff] }
  0x3a   : > { %2153 = vmatmul.msk.f32.gmra.mxu1 %vm293_vm0, %v233_v15  ;;  %v257_v15 = vld [vmem:[%s2846_s12 + $0xe0] sm:$0xff] }
  0x3b   : > { %2499 = vmatpush.msra.mxu3 %v2283_v60 }
  0x3c   : > { %2146 = vmatmul.msk.f32.gmra.mxu3 %vm293_vm0, %v290_v43  ;;  %v281_v43 = vld [vmem:[%s2841_s9 + $0xa0] sm:$0xff] }
  0x3d   : > { %2500 = vmatpush.msra.mxu3 %v2282_v62 }
  0x41   : > { %2122 = vmatmul.msk.f32.gmra.mxu0 %vm293_vm0, %v266_v16 }
  0x42   : > { %2154 = vmatmul.msk.f32.gmra.mxu1 %vm293_vm0, %v234_v17 }
  0x44   : > { %2147 = vmatmul.msk.f32.gmra.mxu3 %vm293_vm0, %v291_v52 }
  0x49   : > { %2123 = vmatmul.msk.f32.gmra.mxu0 %vm293_vm0, %v267_v18 }
  0x4a   : > { %2155 = vmatmul.msk.f32.gmra.mxu1 %vm293_vm0, %v235_v19  ;;  %v278_v19 = vld [vmem:[%s2841_s9 + $0x88] sm:$0xff] }
  0x4c   : > { %2148 = vmatmul.msk.f32.gmra.mxu3 %vm293_vm0, %v292_v61 }
  0x51   : > { %2124 = vmatmul.msk.f32.gmra.mxu0 %vm293_vm0, %v268_v21 }
  0x52   : > { %2156 = vmatmul.msk.f32.gmra.mxu1 %vm293_vm0, %v236_v22 }
  0x54   : > { %2174 = vmatmul.msk.f32.vlgmr.msrb.gmra.mxu3 %vm293_vm0, %v254_v1  ;;  %v252_v1 = vld [vmem:[%s2846_s12 + $0xb8] sm:$0xff] }
  0x59   : > { %2125 = vmatmul.msk.f32.gmra.mxu0 %vm293_vm0, %v269_v24 }
  0x5a   : > { %2157 = vmatmul.msk.f32.gmra.mxu1 %vm293_vm0, %v237_v25 }
  0x5c   : > { %2175 = vmatmul.msk.f32.gmra.mxu3 %vm293_vm0, %v255_v4 }
  0x61   : > { %2126 = vmatmul.msk.f32.gmra.mxu0 %vm293_vm0, %v270_v30 }
  0x62   : > { %2158 = vmatmul.msk.f32.gmra.mxu1 %vm293_vm0, %v238_v31  ;;  %v259_v31 = vld [vmem:[%s2846_s12 + $0xf0] sm:$0xff] }
  0x64   : > { %2176 = vmatmul.msk.f32.gmra.mxu3 %vm293_vm0, %v256_v7  ;;  %v285_v7 = vld [vmem:[%s2841_s9 + $0xc0] sm:$0xff] }
  0x69   : > { %2127 = vmatmul.msk.f32.gmra.mxu0 %vm293_vm0, %v271_v39  ;;  %v260_v39 = vld [vmem:[%s2846_s12 + $0xf8] sm:$0xff] }
  0x6a   : > { %2159 = vmatmul.msk.f32.gmra.mxu1 %vm293_vm0, %v239_v40 }
  0x6c   : > { %2177 = vmatmul.msk.f32.gmra.mxu3 %vm293_vm0, %v257_v15 }
  0x71   : > { %2128 = vmatmul.msk.f32.gmra.mxu0 %vm293_vm0, %v272_v48 }
  0x72   : > { %2160 = vmatmul.msk.f32.gmra.mxu1 %vm293_vm0, %v240_v49 }
  0x74   : > { %2178 = vmatmul.msk.f32.gmra.mxu3 %vm293_vm0, %v258_v23 }
  0x79   : > { %2129 = vmatmul.msk.f32.gmra.mxu0 %vm293_vm0, %v273_v56 }
  0x7a   : > { %2161 = vmatmul.msk.f32.gmra.mxu1 %vm293_vm0, %v241_v57  ;;  %v283_v57 = vld [vmem:[%s2841_s9 + $0xb0] sm:$0xff] }
  0x7c   : > { %2179 = vmatmul.msk.f32.gmra.mxu3 %vm293_vm0, %v259_v31 }
  0x81   : > { %2130 = vmatmul.msk.f32.gmra.mxu0 %vm293_vm0, %v274_v63 }
  0x82   : > { %2162 = vmatmul.msk.f32.gmra.mxu1 %vm293_vm0, %v242_v0  ;;  %v284_v0 = vld [vmem:[%s2841_s9 + $0xb8] sm:$0xff] }
  0x84   : > { %2180 = vmatmul.msk.f32.gmra.mxu3 %vm293_vm0, %v260_v39 }
  0x89   : > { %2131 = vmatmul.msk.f32.gmra.mxu0 %vm293_vm0, %v275_v2 }
  0x8a   : > { %2163 = vmatmul.msk.f32.gmra.mxu1 %vm293_vm0, %v243_v3 }
  0x91   : > { %2132 = vmatmul.msk.f32.gmra.mxu0 %vm293_vm0, %v276_v5 }
  0x92   : > { %2164 = vmatmul.msk.f32.gmra.mxu1 %vm293_vm0, %v244_v6 }
  0x96   : > { %v407_v9 = vpop.f32.mrf.mxu0 }
  0x97   : > { %v616_v10 = vpop.f32.mrf.mxu1 }
  0x98   : > { %v617_v13 = vadd.f32 %v616_v10, %v407_v9  ;;  %v253_v9 = vld [vmem:[%s2846_s12 + $0xc0] sm:$0xff] }
  0x99   : > { %2133 = vmatmul.msk.f32.gmra.mxu0 %vm293_vm0, %v277_v11 }
  0x9a   : > { %2165 = vmatmul.msk.f32.gmra.mxu1 %vm293_vm0, %v245_v12  ;;  %v716_v14 = vadd.f32 %v2959_v8, %v617_v13 }
  0x9c   : > { %v748_v16 = vmax.f32 %v716_v14, 0.0 }
  0x9e   : > { %834 = vmatmul.f32.vlgmr.msra.gmra.mxu2 %v748_v16  ;;  %v410_v17 = vpop.f32.mrf.mxu0 }
  0x9f   : > { %v619_v18 = vpop.f32.mrf.mxu1 }
  0xa0   : > { %v620_v21 = vadd.f32 %v619_v18, %v410_v17 }
  0xa1   : > { %2134 = vmatmul.msk.f32.gmra.mxu0 %vm293_vm0, %v278_v19 }
  0xa2   : > { %2166 = vmatmul.msk.f32.gmra.mxu1 %vm293_vm0, %v246_v20  ;;  %v717_v22 = vadd.f32 %v2959_v8, %v620_v21 }
  0xa4   : > { %v749_v24 = vmax.f32 %v717_v22, 0.0 }
  0xa6   : > { %837 = vmatmul.f32.gmra.mxu2 %v749_v24  ;;  %v413_v25 = vpop.f32.mrf.mxu0 }
  0xa7   : > { %v622_v26 = vpop.f32.mrf.mxu1 }
  0xa8   : > { %v623_v29 = vadd.f32 %v622_v26, %v413_v25 }
  0xa9   : > { %2135 = vmatmul.msk.f32.gmra.mxu0 %vm293_vm0, %v279_v27 }
  0xaa   : > { %2167 = vmatmul.msk.f32.gmra.mxu1 %vm293_vm0, %v247_v28  ;;  %v718_v30 = vadd.f32 %v2959_v8, %v623_v29 }
  0xac   : > { %v750_v32 = vmax.f32 %v718_v30, 0.0 }
  0xae   : > { %840 = vmatmul.f32.gmra.mxu2 %v750_v32  ;;  %v416_v33 = vpop.f32.mrf.mxu0 }
  0xaf   : > { %v625_v34 = vpop.f32.mrf.mxu1 }
  0xb0   : > { %v626_v37 = vadd.f32 %v625_v34, %v416_v33 }
  0xb1   : > { %2136 = vmatmul.msk.f32.gmra.mxu0 %vm293_vm0, %v280_v35 }
  0xb2   : > { %2168 = vmatmul.msk.f32.gmra.mxu1 %vm293_vm0, %v248_v36  ;;  %v719_v38 = vadd.f32 %v2959_v8, %v626_v37 }
  0xb4   : > { %v751_v40 = vmax.f32 %v719_v38, 0.0  ;;  %v3019_v38 = vpop.f32.mrf.mxu3 }
  0xb6   : > { %843 = vmatmul.f32.gmra.mxu2 %v751_v40  ;;  %v419_v41 = vpop.f32.mrf.mxu0 }
  0xb7   : > { %v628_v42 = vpop.f32.mrf.mxu1 }
  0xb8   : > { %v629_v45 = vadd.f32 %v628_v42, %v419_v41 }
  0xb9   : > { %2137 = vmatmul.msk.f32.gmra.mxu0 %vm293_vm0, %v281_v43 }
  0xba   : > { %2169 = vmatmul.msk.f32.gmra.mxu1 %vm293_vm0, %v249_v44  ;;  %v720_v46 = vadd.f32 %v2959_v8, %v629_v45 }
  0xbc   : > { %v752_v47 = vmax.f32 %v720_v46, 0.0  ;;  %v3022_v46 = vpop.f32.mrf.mxu3 }
  0xbe   : > { %846 = vmatmul.f32.gmra.mxu2 %v752_v47  ;;  %v422_v48 = vpop.f32.mrf.mxu0 }
  0xbf   : > { %v631_v49 = vpop.f32.mrf.mxu1 }
  0xc0   : > { %v632_v52 = vadd.f32 %v631_v49, %v422_v48 }
  0xc1   : > { %2138 = vmatmul.msk.f32.gmra.mxu0 %vm293_vm0, %v282_v50 }
  0xc2   : > { %2170 = vmatmul.msk.f32.gmra.mxu1 %vm293_vm0, %v250_v51  ;;  %v721_v53 = vadd.f32 %v2959_v8, %v632_v52 }
  0xc4   : > { %v753_v54 = vmax.f32 %v721_v53, 0.0  ;;  %v3025_v53 = vpop.f32.mrf.mxu3 }
  0xc6   : > { %849 = vmatmul.f32.gmra.mxu2 %v753_v54  ;;  %v425_v55 = vpop.f32.mrf.mxu0 }
  0xc7   : > { %v634_v56 = vpop.f32.mrf.mxu1 }
  0xc8   : > { %v635_v59 = vadd.f32 %v634_v56, %v425_v55 }
  0xc9   : > { %2139 = vmatmul.msk.f32.gmra.mxu0 %vm293_vm0, %v283_v57 }
  0xca   : > { %2171 = vmatmul.msk.f32.gmra.mxu1 %vm293_vm0, %v251_v58  ;;  %v722_v60 = vadd.f32 %v2959_v8, %v635_v59 }
  0xcc   : > { %v754_v61 = vmax.f32 %v722_v60, 0.0  ;;  %v3029_v60 = vpop.f32.mrf.mxu3 }
  0xce   : > { %852 = vmatmul.f32.gmra.mxu2 %v754_v61  ;;  %v428_v62 = vpop.f32.mrf.mxu0 }
  0xcf   : > { %v637_v63 = vpop.f32.mrf.mxu1 }
  0xd0   : > { %v638_v2 = vadd.f32 %v637_v63, %v428_v62 }
  0xd1   : > { %2140 = vmatmul.msk.f32.gmra.mxu0 %vm293_vm0, %v284_v0 }
  0xd2   : > { %2172 = vmatmul.msk.f32.gmra.mxu1 %vm293_vm0, %v252_v1  ;;  %v723_v3 = vadd.f32 %v2959_v8, %v638_v2 }
  0xd4   : > { %v755_v4 = vmax.f32 %v723_v3, 0.0  ;;  %v3032_v3 = vpop.f32.mrf.mxu3 }
  0xd6   : > { %855 = vmatmul.f32.gmra.mxu2 %v755_v4  ;;  %v431_v5 = vpop.f32.mrf.mxu0 }
  0xd7   : > { %v640_v6 = vpop.f32.mrf.mxu1 }
  0xd8   : > { %v641_v10 = vadd.f32 %v640_v6, %v431_v5 }
  0xd9   : > { %2141 = vmatmul.msk.f32.gmra.mxu0 %vm293_vm0, %v285_v7 }
  0xda   : > { %2173 = vmatmul.msk.f32.gmra.mxu1 %vm293_vm0, %v253_v9  ;;  %v724_v11 = vadd.f32 %v2959_v8, %v641_v10  ;;  %v2456_v10 = vld [vmem:[%s3762_s2 + $0xb8] sm:$0xff]  }
  0xdc   : > { %v756_v12 = vmax.f32 %v724_v11, 0.0 }
  0xde   : > { %858 = vmatmul.f32.gmra.mxu2 %v756_v12  ;;  %v434_v13 = vpop.f32.mrf.mxu0 }
  0xdf   : > { %v643_v14 = vpop.f32.mrf.mxu1 }
  0xe0   : > { %v644_v15 = vadd.f32 %v643_v14, %v434_v13  ;;  %v2343_v13 = vunpack.c.h.bf16 %v2456_v10  ;;  %v3038_v14 = vpop.f32.mrf.mxu3 }
  0xe2   : > { %v725_v16 = vadd.f32 %v2959_v8, %v644_v15  ;;  %1001 = vmatpush.msrb.mxu3 %v2343_v13 }
  0xe4   : > { %v757_v17 = vmax.f32 %v725_v16, 0.0 }
  0xe6   : > { %861 = vmatmul.f32.gmra.mxu2 %v757_v17  ;;  %v437_v18 = vpop.f32.mrf.mxu0 }
  0xe7   : > { %v646_v19 = vpop.f32.mrf.mxu1 }
  0xe8   : > { %v647_v20 = vadd.f32 %v646_v19, %v437_v18  ;;  %v2342_v18 = vunpack.c.l.bf16 %v2456_v10  ;;  %v2464_v19 = vld [vmem:[%s3762_s2 + $0xf8] sm:$0xff]  }
  0xea   : > { %v726_v21 = vadd.f32 %v2959_v8, %v647_v20  ;;  %1002 = vmatpush.msrb.mxu3 %v2342_v18  ;;  %v2455_v20 = vld [vmem:[%s3762_s2 + $0xb0] sm:$0xff]  }
  0xec   : > { %v758_v22 = vmax.f32 %v726_v21, 0.0 }
  0xee   : > { %864 = vmatmul.f32.gmra.mxu2 %v758_v22  ;;  %v440_v23 = vpop.f32.mrf.mxu0 }
  0xef   : > { %v649_v24 = vpop.f32.mrf.mxu1 }
  0xf0   : > { %v650_v25 = vadd.f32 %v649_v24, %v440_v23  ;;  %v2375_v23 = vunpack.c.h.bf16 %v2464_v19  ;;  %v2339_v24 = vunpack.c.h.bf16 %v2455_v20 }
  0xf2   : > { %v727_v26 = vadd.f32 %v2959_v8, %v650_v25  ;;  %1184 = vmatpush.msrb.mxu0 %v2375_v23  ;;  %1003 = vmatpush.msrb.mxu3 %v2339_v24 }
  0xf4   : > { %v759_v27 = vmax.f32 %v727_v26, 0.0  ;;  %v3047_v26 = vpop.f32.mrf.mxu3 }
  0xf6   : > { %867 = vmatmul.f32.gmra.mxu2 %v759_v27  ;;  %v443_v28 = vpop.f32.mrf.mxu0 }
  0xf7   : > { %v652_v29 = vpop.f32.mrf.mxu1 }
  0xf8   : > { %v653_v30 = vadd.f32 %v652_v29, %v443_v28  ;;  %v2338_v29 = vunpack.c.l.bf16 %v2455_v20 }
  0xfa   : > { %v728_v31 = vadd.f32 %v2959_v8, %v653_v30  ;;  %1004 = vmatpush.msrb.mxu3 %v2338_v29  ;;  %v2454_v30 = vld [vmem:[%s3762_s2 + $0xa8] sm:$0xff]  }
  0xfc   : > { %v760_v32 = vmax.f32 %v728_v31, 0.0 }
  0xfe   : > { %870 = vmatmul.f32.gmra.mxu2 %v760_v32  ;;  %v446_v33 = vpop.f32.mrf.mxu0 }
  0xff   : > { %v655_v34 = vpop.f32.mrf.mxu1 }
 0x100   : > { %v656_v35 = vadd.f32 %v655_v34, %v446_v33  ;;  %v2335_v33 = vunpack.c.h.bf16 %v2454_v30 }
 0x102   : > { %v729_v36 = vadd.f32 %v2959_v8, %v656_v35  ;;  %1005 = vmatpush.msrb.mxu3 %v2335_v33 }
 0x104   : > { %v761_v37 = vmax.f32 %v729_v36, 0.0  ;;  %v691_v36 = vpop.f32.mrf.mxu3 }
 0x106   : > { %873 = vmatmul.f32.gmra.mxu2 %v761_v37  ;;  %v449_v39 = vpop.f32.mrf.mxu0 }
 0x107   : > { %v658_v40 = vpop.f32.mrf.mxu1 }
 0x108   : > { %v659_v41 = vadd.f32 %v658_v40, %v449_v39  ;;  %v2374_v39 = vunpack.c.l.bf16 %v2464_v19  ;;  %v2334_v40 = vunpack.c.l.bf16 %v2454_v30 }
 0x10a   : > { %v730_v42 = vadd.f32 %v2959_v8, %v659_v41  ;;  %1185 = vmatpush.msrb.mxu0 %v2374_v39  ;;  %1006 = vmatpush.msrb.mxu3 %v2334_v40  ;;  %v2461_v40 = vld [vmem:[%s3762_s2 + $0xe0] sm:$0xff]  }
 0x10c   : > { %v762_v43 = vmax.f32 %v730_v42, 0.0 }
 0x10e   : > { %876 = vmatmul.f32.gmra.mxu2 %v762_v43  ;;  %v452_v44 = vpop.f32.mrf.mxu0 }
 0x10f   : > { %v661_v45 = vpop.f32.mrf.mxu1 }
 0x110   : > { %v662_v47 = vadd.f32 %v661_v45, %v452_v44 }
 0x112   : > { %v731_v48 = vadd.f32 %v2959_v8, %v662_v47  ;;  %v2453_v47 = vld [vmem:[%s3762_s2 + $0xa0] sm:$0xff]  }
 0x114   : > { %v763_v49 = vmax.f32 %v731_v48, 0.0  ;;  %v2331_v48 = vunpack.c.h.bf16 %v2453_v47 }
 0x116   : > { %879 = vmatmul.f32.gmra.mxu2 %v763_v49  ;;  %v455_v50 = vpop.f32.mrf.mxu0  ;;  %v694_v49 = vpop.f32.mrf.mxu3  ;;  %1007 = vmatpush.msrb.mxu3 %v2331_v48 }
 0x117   : > { %v664_v51 = vpop.f32.mrf.mxu1 }
 0x118   : > { %v665_v52 = vadd.f32 %v664_v51, %v455_v50  ;;  %v2330_v50 = vunpack.c.l.bf16 %v2453_v47  ;;  %v2463_v51 = vld [vmem:[%s3762_s2 + $0xf0] sm:$0xff]  }
 0x11a   : > { %v732_v54 = vadd.f32 %v2959_v8, %v665_v52  ;;  %1008 = vmatpush.msrb.mxu3 %v2330_v50 }
 0x11c   : > { %v764_v55 = vmax.f32 %v732_v54, 0.0 }
 0x11e   : > { %882 = vmatmul.f32.gmra.mxu2 %v764_v55  ;;  %v458_v56 = vpop.f32.mrf.mxu0  ;;  %v2371_v55 = vunpack.c.h.bf16 %v2463_v51 }
 0x11f   : > { %v667_v57 = vpop.f32.mrf.mxu1 }
 0x120   : > { %v668_v58 = vadd.f32 %v667_v57, %v458_v56  ;;  %1186 = vmatpush.msrb.mxu0 %v2371_v55 }
 0x121   : > { %v835_v10 = vpop.f32.mrf.mxu2 }
 0x122   : > { %v733_v59 = vadd.f32 %v2959_v8, %v668_v58  ;;  %v692_v58 = vadd.f32 %v691_v36, %v3019_v38  ;;  %v2451_v38 = vld [vmem:[%s3762_s2 + $0x90] sm:$0xff]  }
 0x124   : > { %v765_v61 = vmax.f32 %v733_v59, 0.0 }
 0x126   : > { %885 = vmatmul.f32.gmra.mxu2 %v765_v61  ;;  %v461_v62 = vpop.f32.mrf.mxu0  ;;  %v2452_v61 = vld [vmem:[%s3762_s2 + $0x98] sm:$0xff]  }
 0x127   : > { %v670_v63 = vpop.f32.mrf.mxu1 }
 0x128   : > { %v671_v0 = vadd.f32 %v670_v63, %v461_v62  ;;  %v2327_v62 = vunpack.c.h.bf16 %v2452_v61  ;;  %v2326_v63 = vunpack.c.l.bf16 %v2452_v61 }
 0x129   : > { %v838_v19 = vpop.f32.mrf.mxu2 }
 0x12a   : > { %v734_v1 = vadd.f32 %v2959_v8, %v671_v0  ;;  %1009 = vmatpush.msrb.mxu3 %v2327_v62  ;;  %v741_v0 = vadd.f32 %v2959_v8, %v692_v58 }
 0x12c   : > { %v766_v2 = vmax.f32 %v734_v1, 0.0  ;;  %v697_v1 = vpop.f32.mrf.mxu3  ;;  %1010 = vmatpush.msrb.mxu3 %v2326_v63 }
 0x12e   : > { %888 = vmatmul.f32.gmra.mxu2 %v766_v2  ;;  %v464_v4 = vpop.f32.mrf.mxu0  ;;  %v695_v2 = vadd.f32 %v694_v49, %v3022_v46  ;;  %v2450_v46 = vld [vmem:[%s3762_s2 + $0x88] sm:$0xff]  }
 0x12f   : > { %v673_v5 = vpop.f32.mrf.mxu1 }
 0x130   : > { %v674_v6 = vadd.f32 %v673_v5, %v464_v4  ;;  %v773_v4 = vmax.f32 %v741_v0, 0.0  ;;  %v2370_v5 = vunpack.c.l.bf16 %v2463_v51  ;;  %v2459_v0 = vld [vmem:[%s3762_s2 + $0xd0] sm:$0xff]  }
 0x132   : > { %v735_v7 = vadd.f32 %v2959_v8, %v674_v6  ;;  %v2323_v6 = vunpack.c.h.bf16 %v2451_v38  ;;  %1187 = vmatpush.msrb.mxu0 %v2370_v5 }
 0x134   : > { %v767_v9 = vmax.f32 %v735_v7, 0.0  ;;  %v2322_v7 = vunpack.c.l.bf16 %v2451_v38  ;;  %1011 = vmatpush.msrb.mxu3 %v2323_v6 }
 0x136   : > { %891 = vmatmul.f32.gmra.mxu2 %v767_v9  ;;  %v467_v11 = vpop.f32.mrf.mxu0  ;;  %v742_v9 = vadd.f32 %v2959_v8, %v695_v2  ;;  %1012 = vmatpush.msrb.mxu3 %v2322_v7  ;;  %v2472_v2 = vld [vmem:[%s3762_s2 + $0x138] sm:$0xff]   ;;  %v2354_v7 = vunpack.c.l.bf16 %v2459_v0 }
 0x137   : > { %v676_v12 = vpop.f32.mrf.mxu1 }
 0x138   : > { %v677_v15 = vadd.f32 %v676_v12, %v467_v11  ;;  %v700_v11 = vpop.f32.mrf.mxu3  ;;  %v698_v12 = vadd.f32 %v697_v1, %v3025_v53  ;;  %v774_v13 = vmax.f32 %v742_v9, 0.0  ;;  %v2355_v1 = vunpack.c.h.bf16 %v2459_v0 }
 0x139   : > { %v701_v20 = vadd.f32 %v700_v11, %v3029_v60  ;;  %v2406_v11 = vunpack.c.l.bf16 %v2472_v2 }
 0x13a   : > { %v736_v16 = vadd.f32 %v2959_v8, %v677_v15  ;;  %v2319_v15 = vunpack.c.h.bf16 %v2450_v46  ;;  %v743_v18 = vadd.f32 %v2959_v8, %v698_v12 }
 0x13c   : > { %v768_v17 = vmax.f32 %v736_v16, 0.0  ;;  %v2462_v16 = vld [vmem:[%s3762_s2 + $0xe8] sm:$0xff]   ;;  %1013 = vmatpush.msrb.mxu3 %v2319_v15  ;;  %v775_v53 = vmax.f32 %v743_v18, 0.0 }
 0x13d   : > { %v2366_v30 = vunpack.c.l.bf16 %v2462_v16  ;;  %v2458_v15 = vld [vmem:[%s3762_s2 + $0xc8] sm:$0xff]  }
 0x13e   : > { %894 = vmatmul.f32.gmra.mxu2 %v768_v17  ;;  %v470_v21 = vpop.f32.mrf.mxu0  ;;  %v2367_v17 = vunpack.c.h.bf16 %v2462_v16  ;;  %v2351_v16 = vunpack.c.h.bf16 %v2458_v15 }
 0x13f   : > { %v679_v22 = vpop.f32.mrf.mxu1 }
 0x140   : > { %v680_v25 = vadd.f32 %v679_v22, %v470_v21  ;;  %1188 = vmatpush.msrb.mxu0 %v2367_v17  ;;  %v2318_v21 = vunpack.c.l.bf16 %v2450_v46  ;;  %v2449_v22 = vld [vmem:[%s3762_s2 + $0x80] sm:$0xff]   ;;  %v703_v23 = vpop.f32.mrf.mxu3 }
 0x141   : > { %v2315_v24 = vunpack.c.h.bf16 %v2449_v22 }
 0x142   : > { %v737_v27 = vadd.f32 %v2959_v8, %v680_v25  ;;  %1014 = vmatpush.msrb.mxu3 %v2318_v21  ;;  %v744_v25 = vadd.f32 %v2959_v8, %v701_v20  ;;  %1189 = vmatpush.msrb.mxu0 %v2366_v30 }
 0x144   : > { %v769_v28 = vmax.f32 %v737_v27, 0.0  ;;  %1015 = vmatpush.msrb.mxu3 %v2315_v24  ;;  %v2314_v27 = vunpack.c.l.bf16 %v2449_v22  ;;  %v776_v29 = vmax.f32 %v744_v25, 0.0 }
 0x146   : > { %897 = vmatmul.f32.gmra.mxu2 %v769_v28  ;;  %v473_v31 = vpop.f32.mrf.mxu0  ;;  %v704_v28 = vadd.f32 %v703_v23, %v3032_v3  ;;  %1016 = vmatpush.msrb.mxu3 %v2314_v27  ;;  %v2350_v27 = vunpack.c.l.bf16 %v2458_v15 }
 0x147   : > { %v682_v32 = vpop.f32.mrf.mxu1 }
 0x148   : > { %v683_v34 = vadd.f32 %v682_v32, %v473_v31  ;;  %v841_v31 = vpop.f32.mrf.mxu2  ;;  %v706_v60 = vpop.f32.mrf.mxu3  ;;  %v745_v32 = vadd.f32 %v2959_v8, %v704_v28 }
 0x149   : > { %v707_v33 = vadd.f32 %v706_v60, %v3038_v14  ;;  %v3097_v14 = vld [vmem:[%s3763_s3 + $0x1] ss:$0 sm:$0xff] }
 0x14a   : > { %v738_v35 = vadd.f32 %v2959_v8, %v683_v34  ;;  %v777_v34 = vmax.f32 %v745_v32, 0.0  ;;  %v839_v49 = vadd.f32 %v3097_v14, %v838_v19  ;;  %v2457_v32 = vld [vmem:[%s3762_s2 + $0xc0] sm:$0xff]  }
 0x14b   : > { %v746_v36 = vadd.f32 %v2959_v8, %v707_v33  ;;  %v2347_v33 = vunpack.c.h.bf16 %v2457_v32 }
 0x14c   : > { %v770_v37 = vmax.f32 %v738_v35, 0.0  ;;  %v932_v50 = vmax.f32 %v839_v49, 0.0 }
 0x14d   : > { %v778_v3 = vmax.f32 %v746_v36, 0.0 }
 0x14e   : > { %900 = vmatmul.f32.gmra.mxu2 %v770_v37  ;;  %v476_v41 = vpop.f32.mrf.mxu0 }
 0x14f   : > { %v685_v42 = vpop.f32.mrf.mxu1 }
 0x150   : > { %v686_v43 = vadd.f32 %v685_v42, %v476_v41  ;;  %v844_v35 = vpop.f32.mrf.mxu2  ;;  %v709_v37 = vpop.f32.mrf.mxu3  ;;  %v2363_v41 = vunpack.c.h.bf16 %v2461_v40 }
 0x151   : > { %v710_v39 = vadd.f32 %v709_v37, %v3047_v26  ;;  %v836_v26 = vadd.f32 %v3097_v14, %v835_v10  ;;  %v845_v58 = vadd.f32 %v3097_v14, %v844_v35  ;;  %v2470_v37 = vld [vmem:[%s3762_s2 + $0x128] sm:$0xff]  }
 0x152   : > { %v739_v44 = vadd.f32 %v2959_v8, %v686_v43  ;;  %1190 = vmatpush.msrb.mxu0 %v2363_v41 }
 0x153   : > { %v747_v42 = vadd.f32 %v2959_v8, %v710_v39  ;;  %v931_v48 = vmax.f32 %v836_v26, 0.0 }
 0x154   : > { %v771_v45 = vmax.f32 %v739_v44, 0.0 }
 0x155   : > { %v779_v44 = vmax.f32 %v747_v42, 0.0 }
 0x156   : > { %903 = vmatmul.f32.vlgmr.msra.gmra.mxu3 %v771_v45  ;;  %v479_v52 = vpop.f32.mrf.mxu0  ;;  %v2362_v45 = vunpack.c.l.bf16 %v2461_v40 }
 0x157   : > { %v688_v54 = vpop.f32.mrf.mxu1 }
 0x158   : > { %v689_v56 = vadd.f32 %v688_v54, %v479_v52  ;;  %v847_v43 = vpop.f32.mrf.mxu2  ;;  %1191 = vmatpush.msrb.mxu0 %v2362_v45  ;;  %v842_v54 = vadd.f32 %v3097_v14, %v841_v31 }
 0x159   : > { %v848_v61 = vadd.f32 %v3097_v14, %v847_v43  ;;  %v2346_v43 = vunpack.c.l.bf16 %v2457_v32 }
 0x15a   : > { %v740_v57 = vadd.f32 %v2959_v8, %v689_v56  ;;  %v2460_v8 = vld [vmem:[%s3762_s2 + $0xd8] sm:$0xff]   ;;  %v933_v55 = vmax.f32 %v842_v54, 0.0 }
 0x15b   : > { %v2359_v52 = vunpack.c.h.bf16 %v2460_v8  ;;  %v2358_v56 = vunpack.c.l.bf16 %v2460_v8  ;;  %v935_v63 = vmax.f32 %v848_v61, 0.0 }
 0x15c   : > { %v772_v59 = vmax.f32 %v740_v57, 0.0 }
 0x15d   : > { %1192 = vmatpush.msrb.mxu0 %v2359_v52  ;;  %v2469_v52 = vld [vmem:[%s3762_s2 + $0x120] sm:$0xff]  }
 0x15e   : > { %906 = vmatmul.f32.gmra.mxu3 %v772_v59  ;;  %v934_v59 = vmax.f32 %v845_v58, 0.0  ;;  %v2395_v54 = vunpack.c.h.bf16 %v2469_v52 }
 0x15f   : > { %1193 = vmatpush.msrb.mxu0 %v2358_v56 }
 0x160   : > { %v850_v47 = vpop.f32.mrf.mxu2 }
 0x161   : > { %1194 = vmatpush.msrb.mxu0 %v2355_v1  ;;  %v851_v38 = vadd.f32 %v3097_v14, %v850_v47  ;;  %v3161_v1 = vld [vmem:[%s3763_s3 + $0x2] ss:$0 sm:$0xff] }
 0x163   : > { %v936_v6 = vmax.f32 %v851_v38, 0.0  ;;  %1195 = vmatpush.msrb.mxu0 %v2354_v7  ;;  %v2468_v7 = vld [vmem:[%s3762_s2 + $0x118] sm:$0xff]  }
 0x165   : > { %1196 = vmatpush.msrb.mxu0 %v2351_v16 }
 0x166   : > { %909 = vmatmul.f32.gmra.mxu3 %v773_v4  ;;  %v2407_v4 = vunpack.c.h.bf16 %v2472_v2 }
 0x167   : > { %1197 = vmatpush.msrb.mxu0 %v2350_v27 }
 0x168   : > { %v853_v51 = vpop.f32.mrf.mxu2  ;;  %1367 = vmatpush.msrb.mxu1 %v2407_v4 }
 0x169   : > { %v854_v9 = vadd.f32 %v3097_v14, %v853_v51  ;;  %1198 = vmatpush.msrb.mxu0 %v2347_v33 }
 0x16a   : > { %1368 = vmatpush.msrb.mxu1 %v2406_v11 }
 0x16b   : > { %v937_v10 = vmax.f32 %v854_v9, 0.0  ;;  %1199 = vmatpush.msrb.mxu0 %v2346_v43  ;;  %v2391_v9 = vunpack.c.h.bf16 %v2468_v7 }
 0x16e   : > { %912 = vmatmul.f32.gmra.mxu3 %v774_v13 }
 0x170   : > { %v856_v57 = vpop.f32.mrf.mxu2 }
 0x171   : > { %v857_v13 = vadd.f32 %v3097_v14, %v856_v57 }
 0x173   : > { %v938_v46 = vmax.f32 %v857_v13, 0.0 }
 0x176   : > { %915 = vmatmul.f32.gmra.mxu3 %v775_v53  ;;  %v2471_v53 = vld [vmem:[%s3762_s2 + $0x130] sm:$0xff]  }
 0x177   : > { %v2403_v21 = vunpack.c.h.bf16 %v2471_v53  ;;  %v2402_v28 = vunpack.c.l.bf16 %v2471_v53 }
 0x178   : > { %v859_v62 = vpop.f32.mrf.mxu2 }
 0x179   : > { %v860_v18 = vadd.f32 %v3097_v14, %v859_v62  ;;  %1369 = vmatpush.msrb.mxu1 %v2403_v21 }
 0x17b   : > { %v939_v20 = vmax.f32 %v860_v18, 0.0  ;;  %1370 = vmatpush.msrb.mxu1 %v2402_v28 }
 0x17e   : > { %918 = vmatmul.f32.gmra.mxu3 %v776_v29 }
 0x180   : > { %v862_v5 = vpop.f32.mrf.mxu2 }
 0x181   : > { %v863_v22 = vadd.f32 %v3097_v14, %v862_v5 }
 0x183   : > { %v940_v25 = vmax.f32 %v863_v22, 0.0  ;;  %v2390_v22 = vunpack.c.l.bf16 %v2468_v7 }
 0x186   : > { %921 = vmatmul.f32.gmra.mxu3 %v777_v34 }
 0x188   : > { %v865_v12 = vpop.f32.mrf.mxu2 }
 0x189   : > { %v866_v29 = vadd.f32 %v3097_v14, %v865_v12 }
 0x18b   : > { %v941_v60 = vmax.f32 %v866_v29, 0.0 }
 0x18e   : > { %924 = vmatmul.f32.gmra.mxu3 %v778_v3  ;;  %v2399_v3 = vunpack.c.h.bf16 %v2470_v37 }
 0x190   : > { %v868_v17 = vpop.f32.mrf.mxu2  ;;  %1371 = vmatpush.msrb.mxu1 %v2399_v3 }
 0x191   : > { %v869_v34 = vadd.f32 %v3097_v14, %v868_v17 }
 0x193   : > { %v942_v36 = vmax.f32 %v869_v34, 0.0 }
 0x196   : > { %927 = vmatmul.f32.gmra.mxu3 %v779_v44  ;;  %v2398_v44 = vunpack.c.l.bf16 %v2470_v37 }
 0x198   : > { %v871_v23 = vpop.f32.mrf.mxu2  ;;  %1372 = vmatpush.msrb.mxu1 %v2398_v44 }
 0x199   : > { %v872_v40 = vadd.f32 %v3097_v14, %v871_v23 }
 0x19a   : > { %1373 = vmatpush.msrb.mxu1 %v2395_v54  ;;  %v2466_v54 = vld [vmem:[%s3762_s2 + $0x108] sm:$0xff]  }
 0x19b   : > { %v943_v42 = vmax.f32 %v872_v40, 0.0 }
 0x19e   : > { %1017 = vmatmul.f32.vlgmr.msrb.gmra.mxu3 %v931_v48 }
 0x1a0   : > { %v874_v31 = vpop.f32.mrf.mxu2 }
 0x1a1   : > { %v875_v26 = vadd.f32 %v3097_v14, %v874_v31 }
 0x1a3   : > { %v944_v48 = vmax.f32 %v875_v26, 0.0 }
 0x1a6   : > { %1020 = vmatmul.f32.gmra.mxu3 %v932_v50 }
 0x1a8   : > { %v877_v39 = vpop.f32.mrf.mxu2 }
 0x1a9   : > { %v878_v49 = vadd.f32 %v3097_v14, %v877_v39 }
 0x1ab   : > { %v945_v51 = vmax.f32 %v878_v49, 0.0 }
 0x1ae   : > { %1023 = vmatmul.f32.gmra.mxu3 %v933_v55 }
 0x1b0   : > { %v880_v45 = vpop.f32.mrf.mxu2 }
 0x1b1   : > { %v881_v55 = vadd.f32 %v3097_v14, %v880_v45 }
 0x1b3   : > { %v946_v58 = vmax.f32 %v881_v55, 0.0  ;;  %v2383_v55 = vunpack.c.h.bf16 %v2466_v54 }
 0x1b6   : > { %1026 = vmatmul.f32.gmra.mxu3 %v934_v59  ;;  %v2394_v59 = vunpack.c.l.bf16 %v2469_v52 }
 0x1b8   : > { %v883_v50 = vpop.f32.mrf.mxu2  ;;  %1374 = vmatpush.msrb.mxu1 %v2394_v59 }
 0x1b9   : > { %v884_v61 = vadd.f32 %v3097_v14, %v883_v50 }
 0x1ba   : > { %1375 = vmatpush.msrb.mxu1 %v2391_v9 }
 0x1bc   : > { %1376 = vmatpush.msrb.mxu1 %v2390_v22 }
 0x1be   : > { %1029 = vmatmul.f32.gmra.mxu3 %v935_v63  ;;  %v947_v63 = vmax.f32 %v884_v61, 0.0 }
 0x1c0   : > { %v886_v57 = vpop.f32.mrf.mxu2 }
 0x1c1   : > { %v887_v2 = vadd.f32 %v3097_v14, %v886_v57 }
 0x1c3   : > { %v948_v5 = vmax.f32 %v887_v2, 0.0 }
 0x1c6   : > { %1032 = vmatmul.f32.gmra.mxu3 %v936_v6 }
 0x1c8   : > { %v889_v0 = vpop.f32.mrf.mxu2 }
 0x1c9   : > { %v890_v11 = vadd.f32 %v3097_v14, %v889_v0 }
 0x1ce   : > { %1035 = vmatmul.f32.gmra.mxu3 %v937_v10 }
 0x1d0   : > { %v892_v10 = vpop.f32.mrf.mxu2 }
 0x1d1   : > { %v893_v16 = vadd.f32 %v3097_v14, %v892_v10 }
 0x1d3   : > { %v950_v53 = vmax.f32 %v893_v16, 0.0 }
 0x1d6   : > { %1038 = vmatmul.f32.gmra.mxu3 %v938_v46  ;;  %v949_v46 = vmax.f32 %v890_v11, 0.0 }
 0x1d8   : > { %v895_v17 = vpop.f32.mrf.mxu2 }
 0x1d9   : > { %v3120_v19 = vpop.f32.mrf.mxu3  ;;  %v896_v23 = vadd.f32 %v3097_v14, %v895_v17 }
 0x1db   : > { %v951_v29 = vmax.f32 %v896_v23, 0.0 }
 0x1de   : > { %1041 = vmatmul.f32.gmra.mxu3 %v939_v20 }
 0x1e0   : > { %v898_v28 = vpop.f32.mrf.mxu2 }
 0x1e1   : > { %v3126_v24 = vpop.f32.mrf.mxu3  ;;  %v899_v33 = vadd.f32 %v3097_v14, %v898_v28 }
 0x1e2   : > { %v908_v57 = vadd.f32 %v3097_v14, %v3126_v24 }
 0x1e3   : > { %v952_v37 = vmax.f32 %v899_v33, 0.0 }
 0x1e6   : > { %1044 = vmatmul.f32.gmra.mxu3 %v940_v25 }
 0x1e8   : > { %v901_v3 = vpop.f32.mrf.mxu2 }
 0x1e9   : > { %v3129_v30 = vpop.f32.mrf.mxu3  ;;  %v902_v40 = vadd.f32 %v3097_v14, %v901_v3 }
 0x1ea   : > { %v911_v2 = vadd.f32 %v3097_v14, %v3129_v30 }
 0x1eb   : > { %v953_v44 = vmax.f32 %v902_v40, 0.0 }
 0x1ee   : > { %1047 = vmatmul.f32.gmra.mxu3 %v941_v60  ;;  %v2467_v60 = vld [vmem:[%s3762_s2 + $0x110] sm:$0xff]  }
 0x1ef   : > { %v2387_v32 = vunpack.c.h.bf16 %v2467_v60  ;;  %v2386_v26 = vunpack.c.l.bf16 %v2467_v60 }
 0x1f1   : > { %v3135_v35 = vpop.f32.mrf.mxu3  ;;  %1377 = vmatpush.msrb.mxu1 %v2387_v32 }
 0x1f2   : > { %v914_v9 = vadd.f32 %v3097_v14, %v3135_v35 }
 0x1f3   : > { %1378 = vmatpush.msrb.mxu1 %v2386_v26 }
 0x1f5   : > { %1379 = vmatpush.msrb.mxu1 %v2383_v55 }
 0x1f6   : > { %1050 = vmatmul.f32.gmra.mxu3 %v942_v36 }
 0x1f9   : > { %v3141_v41 = vpop.f32.mrf.mxu3 }
 0x1fe   : > { %1053 = vmatmul.f32.gmra.mxu3 %v943_v42 }
 0x201   : > { %v3144_v47 = vpop.f32.mrf.mxu3 }
 0x206   : > { %1056 = vmatmul.f32.gmra.mxu3 %v944_v48  ;;  %v905_v48 = vadd.f32 %v3097_v14, %v3120_v19  ;;  %v955_v19 = vmax.f32 %v908_v57, 0.0 }
 0x209   : > { %v3147_v8 = vpop.f32.mrf.mxu3 }
 0x20e   : > { %1059 = vmatmul.f32.gmra.mxu3 %v945_v51  ;;  %v954_v51 = vmax.f32 %v905_v48, 0.0 }
 0x211   : > { %v3153_v56 = vpop.f32.mrf.mxu3 }
 0x212   : > { %v926_v33 = vadd.f32 %v3097_v14, %v3153_v56 }
 0x216   : > { %1062 = vmatmul.f32.gmra.mxu3 %v946_v58 }
 0x219   : > { %v3156_v62 = vpop.f32.mrf.mxu3 }
 0x21a   : > { %v929_v40 = vadd.f32 %v3097_v14, %v3156_v62  ;;  %v3230_v62 = vld [vmem:[%s3763_s3 + $0x3] ss:$0 sm:$0xff] }
 0x21e   : > { %1065 = vmatmul.f32.gmra.mxu3 %v947_v63  ;;  %v2480_v63 = vld [vmem:[%s3762_s2 + $0x178] sm:$0xff]  }
 0x21f   : > { %v2439_v0 = vunpack.c.h.bf16 %v2480_v63  ;;  %v2438_v7 = vunpack.c.l.bf16 %v2480_v63 }
 0x221   : > { %v1018_v4 = vpop.f32.mrf.mxu3  ;;  %1550 = vmatpush.msrb.mxu2 %v2439_v0  ;;  %2501 = vmatpush.msra.mxu3 %v2439_v0 }
 0x222   : > { %v1019_v38 = vadd.f32 %v3161_v1, %v1018_v4 }
 0x223   : > { %1551 = vmatpush.msrb.mxu2 %v2438_v7  ;;  %2502 = vmatpush.msra.mxu3 %v2438_v7 }
 0x224   : > { %v1114_v6 = vmax.f32 %v1019_v38, 0.0  ;;  %v956_v38 = vmax.f32 %v911_v2, 0.0 }
 0x226   : > { %1068 = vmatmul.f32.gmra.mxu3 %v948_v5  ;;  %1200 = vmatmul.f32.vlgmr.msrb.gmra.mxu0 %v1114_v6  ;;  %v2382_v6 = vunpack.c.l.bf16 %v2466_v54 }
 0x228   : > { %1380 = vmatpush.msrb.mxu1 %v2382_v6 }
 0x229   : > { %v1021_v12 = vpop.f32.mrf.mxu3 }
 0x22a   : > { %v1022_v13 = vadd.f32 %v3161_v1, %v1021_v12  ;;  %v957_v12 = vmax.f32 %v914_v9, 0.0 }
 0x22c   : > { %v1115_v15 = vmax.f32 %v1022_v13, 0.0  ;;  %v2465_v13 = vld [vmem:[%s3762_s2 + $0x100] sm:$0xff]  }
 0x22e   : > { %1071 = vmatmul.f32.gmra.mxu3 %v949_v46  ;;  %1203 = vmatmul.f32.gmra.mxu0 %v1115_v15  ;;  %v2379_v46 = vunpack.c.h.bf16 %v2465_v13  ;;  %v917_v15 = vadd.f32 %v3097_v14, %v3141_v41 }
 0x230   : > { %1381 = vmatpush.msrb.mxu1 %v2379_v46  ;;  %v958_v17 = vmax.f32 %v917_v15, 0.0 }
 0x231   : > { %v1024_v18 = vpop.f32.mrf.mxu3 }
 0x232   : > { %v1025_v20 = vadd.f32 %v3161_v1, %v1024_v18 }
 0x234   : > { %v1116_v21 = vmax.f32 %v1025_v20, 0.0  ;;  %v2479_v20 = vld [vmem:[%s3762_s2 + $0x170] sm:$0xff]  }
 0x235   : > { %v2434_v28 = vunpack.c.l.bf16 %v2479_v20 }
 0x236   : > { %1074 = vmatmul.f32.gmra.mxu3 %v950_v53  ;;  %1206 = vmatmul.f32.gmra.mxu0 %v1116_v21  ;;  %v2435_v53 = vunpack.c.h.bf16 %v2479_v20  ;;  %v920_v21 = vadd.f32 %v3097_v14, %v3144_v47 }
 0x238   : > { %1552 = vmatpush.msrb.mxu2 %v2435_v53  ;;  %2503 = vmatpush.msra.mxu3 %v2435_v53  ;;  %v959_v23 = vmax.f32 %v920_v21, 0.0 }
 0x239   : > { %v1027_v25 = vpop.f32.mrf.mxu3 }
 0x23a   : > { %v1028_v27 = vadd.f32 %v3161_v1, %v1027_v25  ;;  %1553 = vmatpush.msrb.mxu2 %v2434_v28  ;;  %2504 = vmatpush.msra.mxu3 %v2434_v28 }
 0x23c   : > { %v1117_v31 = vmax.f32 %v1028_v27, 0.0  ;;  %v2378_v27 = vunpack.c.l.bf16 %v2465_v13 }
 0x23e   : > { %1077 = vmatmul.f32.gmra.mxu3 %v951_v29  ;;  %1209 = vmatmul.f32.gmra.mxu0 %v1117_v31  ;;  %v923_v29 = vadd.f32 %v3097_v14, %v3147_v8  ;;  %v961_v8 = vmax.f32 %v926_v33, 0.0 }
 0x23f   : > { %1382 = vmatpush.msrb.mxu1 %v2378_v27 }
 0x240   : > { %v960_v32 = vmax.f32 %v923_v29, 0.0 }
 0x241   : > { %v1030_v34 = vpop.f32.mrf.mxu3 }
 0x242   : > { %v1031_v36 = vadd.f32 %v3161_v1, %v1030_v34  ;;  %v2478_v34 = vld [vmem:[%s3762_s2 + $0x168] sm:$0xff]  }
 0x244   : > { %v1118_v39 = vmax.f32 %v1031_v36, 0.0 }
 0x246   : > { %1080 = vmatmul.f32.gmra.mxu3 %v952_v37  ;;  %1212 = vmatmul.f32.gmra.mxu0 %v1118_v39  ;;  %v2431_v37 = vunpack.c.h.bf16 %v2478_v34 }
 0x248   : > { %1554 = vmatpush.msrb.mxu2 %v2431_v37  ;;  %2505 = vmatpush.msra.mxu3 %v2431_v37 }
 0x249   : > { %v1033_v42 = vpop.f32.mrf.mxu3 }
 0x24a   : > { %v1034_v43 = vadd.f32 %v3161_v1, %v1033_v42 }
 0x24c   : > { %v1119_v45 = vmax.f32 %v1034_v43, 0.0  ;;  %v962_v43 = vmax.f32 %v929_v40, 0.0 }
 0x24e   : > { %1083 = vmatmul.f32.gmra.mxu3 %v953_v44  ;;  %1215 = vmatmul.f32.gmra.mxu0 %v1119_v45  ;;  %v2430_v45 = vunpack.c.l.bf16 %v2478_v34 }
 0x250   : > { %1555 = vmatpush.msrb.mxu2 %v2430_v45  ;;  %2506 = vmatpush.msra.mxu3 %v2430_v45 }
 0x251   : > { %v1036_v49 = vpop.f32.mrf.mxu3 }
 0x252   : > { %v1037_v50 = vadd.f32 %v3161_v1, %v1036_v49 }
 0x254   : > { %v1120_v52 = vmax.f32 %v1037_v50, 0.0  ;;  %v2477_v50 = vld [vmem:[%s3762_s2 + $0x160] sm:$0xff]  }
 0x255   : > { %v2427_v14 = vunpack.c.h.bf16 %v2477_v50 }
 0x256   : > { %1086 = vmatmul.f32.gmra.mxu3 %v954_v51  ;;  %1218 = vmatmul.f32.gmra.mxu0 %v1120_v52 }
 0x257   : > { %1556 = vmatpush.msrb.mxu2 %v2427_v14  ;;  %2507 = vmatpush.msra.mxu3 %v2427_v14  ;;  %v2474_v14 = vld [vmem:[%s3762_s2 + $0x148] sm:$0xff]  }
 0x259   : > { %v1039_v58 = vpop.f32.mrf.mxu3 }
 0x25a   : > { %v1040_v59 = vadd.f32 %v3161_v1, %v1039_v58 }
 0x25c   : > { %v1121_v61 = vmax.f32 %v1040_v59, 0.0 }
 0x25e   : > { %1089 = vmatmul.f32.gmra.mxu3 %v955_v19  ;;  %1221 = vmatmul.f32.gmra.mxu0 %v1121_v61 }
 0x261   : > { %v1042_v4 = vpop.f32.mrf.mxu3 }
 0x262   : > { %v1043_v24 = vadd.f32 %v3161_v1, %v1042_v4  ;;  %v2426_v4 = vunpack.c.l.bf16 %v2477_v50 }
 0x264   : > { %v1122_v5 = vmax.f32 %v1043_v24, 0.0  ;;  %1557 = vmatpush.msrb.mxu2 %v2426_v4  ;;  %2508 = vmatpush.msra.mxu3 %v2426_v4 }
 0x266   : > { %1092 = vmatmul.f32.gmra.mxu3 %v956_v38  ;;  %1224 = vmatmul.f32.gmra.mxu0 %v1122_v5 }
 0x269   : > { %v1045_v10 = vpop.f32.mrf.mxu3 }
 0x26a   : > { %v1046_v11 = vadd.f32 %v3161_v1, %v1045_v10  ;;  %v2476_v10 = vld [vmem:[%s3762_s2 + $0x158] sm:$0xff]  }
 0x26b   : > { %v2422_v21 = vunpack.c.l.bf16 %v2476_v10 }
 0x26c   : > { %v1123_v30 = vmax.f32 %v1046_v11, 0.0  ;;  %v2423_v11 = vunpack.c.h.bf16 %v2476_v10 }
 0x26e   : > { %1095 = vmatmul.f32.gmra.mxu3 %v957_v12  ;;  %1227 = vmatmul.f32.gmra.mxu0 %v1123_v30 }
 0x26f   : > { %1558 = vmatpush.msrb.mxu2 %v2423_v11  ;;  %2509 = vmatpush.msra.mxu3 %v2423_v11  ;;  %v2473_v11 = vld [vmem:[%s3762_s2 + $0x140] sm:$0xff]  }
 0x271   : > { %v1048_v16 = vpop.f32.mrf.mxu3  ;;  %1559 = vmatpush.msrb.mxu2 %v2422_v21  ;;  %2510 = vmatpush.msra.mxu3 %v2422_v21 }
 0x272   : > { %v1049_v35 = vadd.f32 %v3161_v1, %v1048_v16 }
 0x274   : > { %v1124_v18 = vmax.f32 %v1049_v35, 0.0 }
 0x276   : > { %1098 = vmatmul.f32.gmra.mxu3 %v958_v17  ;;  %1230 = vmatmul.f32.gmra.mxu0 %v1124_v18 }
 0x279   : > { %v1051_v22 = vpop.f32.mrf.mxu3 }
 0x27a   : > { %v1052_v41 = vadd.f32 %v3161_v1, %v1051_v22 }
 0x27c   : > { %v1125_v25 = vmax.f32 %v1052_v41, 0.0 }
 0x27e   : > { %1101 = vmatmul.f32.gmra.mxu3 %v959_v23  ;;  %1233 = vmatmul.f32.gmra.mxu0 %v1125_v25 }
 0x281   : > { %v1054_v31 = vpop.f32.mrf.mxu3 }
 0x282   : > { %v1055_v60 = vadd.f32 %v3161_v1, %v1054_v31  ;;  %v2475_v31 = vld [vmem:[%s3762_s2 + $0x150] sm:$0xff]  }
 0x284   : > { %v1126_v47 = vmax.f32 %v1055_v60, 0.0  ;;  %v2419_v60 = vunpack.c.h.bf16 %v2475_v31 }
 0x286   : > { %1104 = vmatmul.f32.gmra.mxu3 %v960_v32  ;;  %1236 = vmatmul.f32.gmra.mxu0 %v1126_v47 }
 0x287   : > { %1560 = vmatpush.msrb.mxu2 %v2419_v60  ;;  %2511 = vmatpush.msra.mxu3 %v2419_v60 }
 0x289   : > { %v1057_v36 = vpop.f32.mrf.mxu3 }
 0x28a   : > { %v1058_v39 = vadd.f32 %v3161_v1, %v1057_v36 }
 0x28c   : > { %v1127_v3 = vmax.f32 %v1058_v39, 0.0 }
 0x28e   : > { %1107 = vmatmul.f32.gmra.mxu3 %v961_v8  ;;  %1239 = vmatmul.f32.gmra.mxu0 %v1127_v3 }
 0x291   : > { %v1060_v42 = vpop.f32.mrf.mxu3 }
 0x292   : > { %v1061_v56 = vadd.f32 %v3161_v1, %v1060_v42 }
 0x294   : > { %v1128_v44 = vmax.f32 %v1061_v56, 0.0  ;;  %v2418_v56 = vunpack.c.l.bf16 %v2475_v31 }
 0x296   : > { %1110 = vmatmul.f32.gmra.mxu3 %v962_v43  ;;  %1242 = vmatmul.f32.gmra.mxu0 %v1128_v44 }
 0x297   : > { %1561 = vmatpush.msrb.mxu2 %v2418_v56  ;;  %2512 = vmatpush.msra.mxu3 %v2418_v56 }
 0x299   : > { %v1063_v26 = vpop.f32.mrf.mxu3 }
 0x29a   : > { %v1064_v48 = vadd.f32 %v3161_v1, %v1063_v26 }
 0x29c   : > { %v1129_v49 = vmax.f32 %v1064_v48, 0.0 }
 0x29e   : > { %1245 = vmatmul.f32.gmra.mxu0 %v1129_v49 }
 0x2a1   : > { %v1066_v51 = vpop.f32.mrf.mxu3 }
 0x2a2   : > { %v1067_v52 = vadd.f32 %v3161_v1, %v1066_v51  ;;  %v2415_v51 = vunpack.c.h.bf16 %v2474_v14 }
 0x2a3   : > { %v1201_v54 = vpop.f32.mrf.mxu0 }
 0x2a4   : > { %v1130_v55 = vmax.f32 %v1067_v52, 0.0  ;;  %v1202_v57 = vadd.f32 %v3230_v62, %v1201_v54  ;;  %1562 = vmatpush.msrb.mxu2 %v2415_v51  ;;  %2513 = vmatpush.msra.mxu3 %v2415_v51 }
 0x2a6   : > { %v1297_v58 = vmax.f32 %v1202_v57, 0.0  ;;  %1248 = vmatmul.f32.gmra.mxu0 %v1130_v55 }
 0x2a8   : > { %1383 = vmatmul.f32.vlgmr.msrb.gmra.mxu1 %v1297_v58 }
 0x2a9   : > { %v1069_v59 = vpop.f32.mrf.mxu3 }
 0x2aa   : > { %v1070_v19 = vadd.f32 %v3161_v1, %v1069_v59 }
 0x2ab   : > { %v1204_v61 = vpop.f32.mrf.mxu0 }
 0x2ac   : > { %v1131_v63 = vmax.f32 %v1070_v19, 0.0  ;;  %v1205_v0 = vadd.f32 %v3230_v62, %v1204_v61  ;;  %v2414_v19 = vunpack.c.l.bf16 %v2474_v14 }
 0x2ae   : > { %v1298_v2 = vmax.f32 %v1205_v0, 0.0  ;;  %1251 = vmatmul.f32.gmra.mxu0 %v1131_v63  ;;  %1563 = vmatpush.msrb.mxu2 %v2414_v19 }
 0x2af   : > { %2514 = vmatpush.msra.mxu3 %v2414_v19 }
 0x2b0   : > { %1386 = vmatmul.f32.gmra.mxu1 %v1298_v2 }
 0x2b1   : > { %v1072_v24 = vpop.f32.mrf.mxu3 }
 0x2b2   : > { %v1073_v38 = vadd.f32 %v3161_v1, %v1072_v24 }
 0x2b3   : > { %v1207_v5 = vpop.f32.mrf.mxu0 }
 0x2b4   : > { %v1132_v6 = vmax.f32 %v1073_v38, 0.0  ;;  %v1208_v7 = vadd.f32 %v3230_v62, %v1207_v5 }
 0x2b6   : > { %v1299_v9 = vmax.f32 %v1208_v7, 0.0  ;;  %1254 = vmatmul.f32.gmra.mxu0 %v1132_v6 }
 0x2b8   : > { %1389 = vmatmul.f32.gmra.mxu1 %v1299_v9 }
 0x2b9   : > { %v1075_v12 = vpop.f32.mrf.mxu3 }
 0x2ba   : > { %v1076_v30 = vadd.f32 %v3161_v1, %v1075_v12  ;;  %v2411_v12 = vunpack.c.h.bf16 %v2473_v11 }
 0x2bb   : > { %v1210_v13 = vpop.f32.mrf.mxu0 }
 0x2bc   : > { %v1133_v46 = vmax.f32 %v1076_v30, 0.0  ;;  %v1211_v15 = vadd.f32 %v3230_v62, %v1210_v13  ;;  %1564 = vmatpush.msrb.mxu2 %v2411_v12  ;;  %2515 = vmatpush.msra.mxu3 %v2411_v12 }
 0x2be   : > { %v1300_v16 = vmax.f32 %v1211_v15, 0.0  ;;  %1257 = vmatmul.f32.gmra.mxu0 %v1133_v46 }
 0x2c0   : > { %1392 = vmatmul.f32.gmra.mxu1 %v1300_v16 }
 0x2c1   : > { %v1078_v35 = vpop.f32.mrf.mxu3 }
 0x2c2   : > { %v1079_v17 = vadd.f32 %v3161_v1, %v1078_v35 }
 0x2c3   : > { %v1213_v18 = vpop.f32.mrf.mxu0 }
 0x2c4   : > { %v1134_v20 = vmax.f32 %v1079_v17, 0.0  ;;  %v1214_v53 = vadd.f32 %v3230_v62, %v1213_v18  ;;  %v2410_v17 = vunpack.c.l.bf16 %v2473_v11 }
 0x2c6   : > { %v1301_v22 = vmax.f32 %v1214_v53, 0.0  ;;  %1260 = vmatmul.f32.gmra.mxu0 %v1134_v20  ;;  %1565 = vmatpush.msrb.mxu2 %v2410_v17 }
 0x2c7   : > { %2516 = vmatpush.msra.mxu3 %v2410_v17 }
 0x2c8   : > { %1395 = vmatmul.f32.gmra.mxu1 %v1301_v22 }
 0x2c9   : > { %v1081_v41 = vpop.f32.mrf.mxu3 }
 0x2ca   : > { %v1082_v23 = vadd.f32 %v3161_v1, %v1081_v41 }
 0x2cb   : > { %v1216_v25 = vpop.f32.mrf.mxu0 }
 0x2cc   : > { %v1135_v27 = vmax.f32 %v1082_v23, 0.0  ;;  %v1217_v28 = vadd.f32 %v3230_v62, %v1216_v25 }
 0x2ce   : > { %v1302_v29 = vmax.f32 %v1217_v28, 0.0  ;;  %1263 = vmatmul.f32.gmra.mxu0 %v1135_v27 }
 0x2d0   : > { %1398 = vmatmul.f32.gmra.mxu1 %v1302_v29 }
 0x2d1   : > { %v1084_v32 = vpop.f32.mrf.mxu3 }
 0x2d2   : > { %v1085_v47 = vadd.f32 %v3161_v1, %v1084_v32 }
 0x2d3   : > { %v1219_v33 = vpop.f32.mrf.mxu0 }
 0x2d4   : > { %v1136_v34 = vmax.f32 %v1085_v47, 0.0  ;;  %v1220_v36 = vadd.f32 %v3230_v62, %v1219_v33 }
 0x2d6   : > { %v1303_v37 = vmax.f32 %v1220_v36, 0.0  ;;  %1266 = vmatmul.f32.gmra.mxu0 %v1136_v34 }
 0x2d8   : > { %1401 = vmatmul.f32.gmra.mxu1 %v1303_v37  ;;  %v3279_v37 = vld [vmem:[%s3763_s3 + $0x4] ss:$0 sm:$0xff] }
 0x2d9   : > { %v1087_v39 = vpop.f32.mrf.mxu3 }
 0x2da   : > { %v1088_v8 = vadd.f32 %v3161_v1, %v1087_v39 }
 0x2db   : > { %v1222_v3 = vpop.f32.mrf.mxu0 }
 0x2dc   : > { %v1137_v40 = vmax.f32 %v1088_v8, 0.0  ;;  %v1223_v42 = vadd.f32 %v3230_v62, %v1222_v3 }
 0x2de   : > { %v1304_v43 = vmax.f32 %v1223_v42, 0.0  ;;  %1269 = vmatmul.f32.gmra.mxu0 %v1137_v40 }
 0x2e0   : > { %1404 = vmatmul.f32.gmra.mxu1 %v1304_v43 }
 0x2e1   : > { %v1090_v44 = vpop.f32.mrf.mxu3 }
 0x2e2   : > { %v1091_v45 = vadd.f32 %v3161_v1, %v1090_v44 }
 0x2e3   : > { %v1225_v26 = vpop.f32.mrf.mxu0 }
 0x2e4   : > { %v1138_v48 = vmax.f32 %v1091_v45, 0.0  ;;  %v1226_v49 = vadd.f32 %v3230_v62, %v1225_v26 }
 0x2e6   : > { %v1305_v50 = vmax.f32 %v1226_v49, 0.0  ;;  %1272 = vmatmul.f32.gmra.mxu0 %v1138_v48 }
 0x2e8   : > { %1407 = vmatmul.f32.gmra.mxu1 %v1305_v50 }
 0x2e9   : > { %v1093_v52 = vpop.f32.mrf.mxu3 }
 0x2ea   : > { %v1094_v54 = vadd.f32 %v3161_v1, %v1093_v52 }
 0x2eb   : > { %v1228_v55 = vpop.f32.mrf.mxu0 }
 0x2ec   : > { %v1139_v57 = vmax.f32 %v1094_v54, 0.0  ;;  %v1229_v58 = vadd.f32 %v3230_v62, %v1228_v55 }
 0x2ee   : > { %v1306_v59 = vmax.f32 %v1229_v58, 0.0  ;;  %1275 = vmatmul.f32.gmra.mxu0 %v1139_v57 }
 0x2f0   : > { %1410 = vmatmul.f32.gmra.mxu1 %v1306_v59 }
 0x2f1   : > { %v1096_v61 = vpop.f32.mrf.mxu3 }
 0x2f2   : > { %v1097_v63 = vadd.f32 %v3161_v1, %v1096_v61 }
 0x2f3   : > { %v1231_v0 = vpop.f32.mrf.mxu0 }
 0x2f4   : > { %v1140_v2 = vmax.f32 %v1097_v63, 0.0  ;;  %v1232_v4 = vadd.f32 %v3230_v62, %v1231_v0 }
 0x2f6   : > { %v1307_v24 = vmax.f32 %v1232_v4, 0.0  ;;  %1278 = vmatmul.f32.gmra.mxu0 %v1140_v2 }
 0x2f8   : > { %1413 = vmatmul.f32.gmra.mxu1 %v1307_v24 }
 0x2f9   : > { %v1099_v38 = vpop.f32.mrf.mxu3 }
 0x2fa   : > { %v1100_v5 = vadd.f32 %v3161_v1, %v1099_v38 }
 0x2fb   : > { %v1234_v6 = vpop.f32.mrf.mxu0 }
 0x2fc   : > { %v1141_v7 = vmax.f32 %v1100_v5, 0.0  ;;  %v1235_v9 = vadd.f32 %v3230_v62, %v1234_v6 }
 0x2fe   : > { %v1308_v10 = vmax.f32 %v1235_v9, 0.0  ;;  %1281 = vmatmul.f32.gmra.mxu0 %v1141_v7 }
 0x300   : > { %1416 = vmatmul.f32.gmra.mxu1 %v1308_v10 }
 0x301   : > { %v1102_v30 = vpop.f32.mrf.mxu3 }
 0x302   : > { %v1103_v13 = vadd.f32 %v3161_v1, %v1102_v30 }
 0x303   : > { %v1237_v46 = vpop.f32.mrf.mxu0 }
 0x304   : > { %v1142_v15 = vmax.f32 %v1103_v13, 0.0  ;;  %v1238_v16 = vadd.f32 %v3230_v62, %v1237_v46 }
 0x306   : > { %v1309_v35 = vmax.f32 %v1238_v16, 0.0  ;;  %1284 = vmatmul.f32.gmra.mxu0 %v1142_v15 }
 0x308   : > { %1419 = vmatmul.f32.gmra.mxu1 %v1309_v35 }
 0x309   : > { %v1105_v18 = vpop.f32.mrf.mxu3 }
 0x30a   : > { %v1106_v20 = vadd.f32 %v3161_v1, %v1105_v18 }
 0x30b   : > { %v1240_v53 = vpop.f32.mrf.mxu0 }
 0x30c   : > { %v1143_v21 = vmax.f32 %v1106_v20, 0.0  ;;  %v1241_v22 = vadd.f32 %v3230_v62, %v1240_v53 }
 0x30e   : > { %v1310_v41 = vmax.f32 %v1241_v22, 0.0  ;;  %1287 = vmatmul.f32.gmra.mxu0 %v1143_v21 }
 0x310   : > { %1422 = vmatmul.f32.gmra.mxu1 %v1310_v41 }
 0x311   : > { %v1108_v23 = vpop.f32.mrf.mxu3 }
 0x312   : > { %v1109_v25 = vadd.f32 %v3161_v1, %v1108_v23 }
 0x313   : > { %v1243_v27 = vpop.f32.mrf.mxu0 }
 0x314   : > { %v1144_v28 = vmax.f32 %v1109_v25, 0.0  ;;  %v1244_v29 = vadd.f32 %v3230_v62, %v1243_v27 }
 0x316   : > { %v1311_v31 = vmax.f32 %v1244_v29, 0.0  ;;  %1290 = vmatmul.f32.gmra.mxu0 %v1144_v28 }
 0x318   : > { %1425 = vmatmul.f32.gmra.mxu1 %v1311_v31 }
 0x319   : > { %v1111_v60 = vpop.f32.mrf.mxu3 }
 0x31a   : > { %v1112_v32 = vadd.f32 %v3161_v1, %v1111_v60 }
 0x31b   : > { %v1246_v47 = vpop.f32.mrf.mxu0 }
 0x31c   : > { %v1145_v33 = vmax.f32 %v1112_v32, 0.0  ;;  %v1247_v34 = vadd.f32 %v3230_v62, %v1246_v47 }
 0x31e   : > { %v1312_v36 = vmax.f32 %v1247_v34, 0.0  ;;  %1293 = vmatmul.f32.gmra.mxu0 %v1145_v33 }
 0x320   : > { %1428 = vmatmul.f32.gmra.mxu1 %v1312_v36 }
 0x323   : > { %v1249_v39 = vpop.f32.mrf.mxu0 }
 0x324   : > { %v1250_v8 = vadd.f32 %v3230_v62, %v1249_v39 }
 0x325   : > { %v1384_v3 = vpop.f32.mrf.mxu1 }
 0x326   : > { %v1313_v40 = vmax.f32 %v1250_v8, 0.0  ;;  %v1385_v42 = vadd.f32 %v3279_v37, %v1384_v3 }
 0x328   : > { %v1480_v1 = vmax.f32 %v1385_v42, 0.0  ;;  %1431 = vmatmul.f32.gmra.mxu1 %v1313_v40 }
 0x32a   : > { %1566 = vmatmul.f32.vlgmr.msrb.gmra.mxu2 %v1480_v1 }
 0x32b   : > { %v1252_v56 = vpop.f32.mrf.mxu0 }
 0x32c   : > { %v1253_v43 = vadd.f32 %v3230_v62, %v1252_v56 }
 0x32d   : > { %v1387_v44 = vpop.f32.mrf.mxu1 }
 0x32e   : > { %v1314_v45 = vmax.f32 %v1253_v43, 0.0  ;;  %v1388_v26 = vadd.f32 %v3279_v37, %v1387_v44 }
 0x330   : > { %v1481_v48 = vmax.f32 %v1388_v26, 0.0  ;;  %1434 = vmatmul.f32.gmra.mxu1 %v1314_v45 }
 0x332   : > { %1569 = vmatmul.f32.gmra.mxu2 %v1481_v48 }
 0x333   : > { %v1255_v49 = vpop.f32.mrf.mxu0 }
 0x334   : > { %v1256_v50 = vadd.f32 %v3230_v62, %v1255_v49 }
 0x335   : > { %v1390_v14 = vpop.f32.mrf.mxu1 }
 0x336   : > { %v1315_v51 = vmax.f32 %v1256_v50, 0.0  ;;  %v1391_v52 = vadd.f32 %v3279_v37, %v1390_v14 }
 0x338   : > { %v1482_v54 = vmax.f32 %v1391_v52, 0.0  ;;  %1437 = vmatmul.f32.gmra.mxu1 %v1315_v51 }
 0x33a   : > { %1572 = vmatmul.f32.gmra.mxu2 %v1482_v54 }
 0x33b   : > { %v1258_v55 = vpop.f32.mrf.mxu0 }
 0x33c   : > { %v1259_v57 = vadd.f32 %v3230_v62, %v1258_v55 }
 0x33d   : > { %v1393_v58 = vpop.f32.mrf.mxu1 }
 0x33e   : > { %v1316_v59 = vmax.f32 %v1259_v57, 0.0  ;;  %v1394_v19 = vadd.f32 %v3279_v37, %v1393_v58 }
 0x340   : > { %v1483_v61 = vmax.f32 %v1394_v19, 0.0  ;;  %1440 = vmatmul.f32.gmra.mxu1 %v1316_v59 }
 0x342   : > { %1575 = vmatmul.f32.gmra.mxu2 %v1483_v61 }
 0x343   : > { %v1261_v63 = vpop.f32.mrf.mxu0 }
 0x344   : > { %v1262_v0 = vadd.f32 %v3230_v62, %v1261_v63 }
 0x345   : > { %v1396_v2 = vpop.f32.mrf.mxu1 }
 0x346   : > { %v1317_v4 = vmax.f32 %v1262_v0, 0.0  ;;  %v1397_v24 = vadd.f32 %v3279_v37, %v1396_v2 }
 0x348   : > { %v1484_v38 = vmax.f32 %v1397_v24, 0.0  ;;  %1443 = vmatmul.f32.gmra.mxu1 %v1317_v4 }
 0x34a   : > { %1578 = vmatmul.f32.gmra.mxu2 %v1484_v38 }
 0x34b   : > { %v1264_v5 = vpop.f32.mrf.mxu0 }
 0x34c   : > { %v1265_v6 = vadd.f32 %v3230_v62, %v1264_v5 }
 0x34d   : > { %v1399_v7 = vpop.f32.mrf.mxu1 }
 0x34e   : > { %v1318_v9 = vmax.f32 %v1265_v6, 0.0  ;;  %v1400_v10 = vadd.f32 %v3279_v37, %v1399_v7 }
 0x350   : > { %v1485_v11 = vmax.f32 %v1400_v10, 0.0  ;;  %1446 = vmatmul.f32.gmra.mxu1 %v1318_v9 }
 0x352   : > { %1581 = vmatmul.f32.gmra.mxu2 %v1485_v11  ;;  %v1663_v11 = vlaneseq }
 0x353   : > { %v1267_v12 = vpop.f32.mrf.mxu0 }
 0x354   : > { %v1268_v30 = vadd.f32 %v3230_v62, %v1267_v12 }
 0x355   : > { %v1402_v13 = vpop.f32.mrf.mxu1 }
 0x356   : > { %v1319_v46 = vmax.f32 %v1268_v30, 0.0  ;;  %v1403_v15 = vadd.f32 %v3279_v37, %v1402_v13  ;;  %v3314_v13 = vand.u32 127, %v1663_v11 }
 0x358   : > { %v1486_v16 = vmax.f32 %v1403_v15, 0.0  ;;  %1449 = vmatmul.f32.gmra.mxu1 %v1319_v46  ;;  %v3319_v46 = vld [vmem:[%s3763_s3 + $0x5] ss:$0 sm:$0xff]  ;;  %vm1665_vm1 = vcmp.lt.s32.totalorder %v3314_v13, 8 }
 0x35a   : > { %1584 = vmatmul.f32.gmra.mxu2 %v1486_v16 }
 0x35b   : > { %v1270_v35 = vpop.f32.mrf.mxu0 }
 0x35c   : > { %v1271_v17 = vadd.f32 %v3230_v62, %v1270_v35 }
 0x35d   : > { %v1405_v18 = vpop.f32.mrf.mxu1 }
 0x35e   : > { %v1320_v20 = vmax.f32 %v1271_v17, 0.0  ;;  %v1406_v53 = vadd.f32 %v3279_v37, %v1405_v18 }
 0x360   : > { %v1487_v21 = vmax.f32 %v1406_v53, 0.0  ;;  %1452 = vmatmul.f32.gmra.mxu1 %v1320_v20 }
 0x362   : > { %1587 = vmatmul.f32.gmra.mxu2 %v1487_v21 }
 0x363   : > { %v1273_v22 = vpop.f32.mrf.mxu0 }
 0x364   : > { %v1274_v41 = vadd.f32 %v3230_v62, %v1273_v22 }
 0x365   : > { %v1408_v23 = vpop.f32.mrf.mxu1 }
 0x366   : > { %v1321_v25 = vmax.f32 %v1274_v41, 0.0  ;;  %v1409_v27 = vadd.f32 %v3279_v37, %v1408_v23 }
 0x368   : > { %v1488_v28 = vmax.f32 %v1409_v27, 0.0  ;;  %1455 = vmatmul.f32.gmra.mxu1 %v1321_v25 }
 0x36a   : > { %1590 = vmatmul.f32.gmra.mxu2 %v1488_v28 }
 0x36b   : > { %v1276_v29 = vpop.f32.mrf.mxu0 }
 0x36c   : > { %v1277_v31 = vadd.f32 %v3230_v62, %v1276_v29 }
 0x36d   : > { %v1411_v60 = vpop.f32.mrf.mxu1 }
 0x36e   : > { %v1322_v32 = vmax.f32 %v1277_v31, 0.0  ;;  %v1412_v47 = vadd.f32 %v3279_v37, %v1411_v60 }
 0x370   : > { %v1489_v33 = vmax.f32 %v1412_v47, 0.0  ;;  %1458 = vmatmul.f32.gmra.mxu1 %v1322_v32 }
 0x372   : > { %1593 = vmatmul.f32.gmra.mxu2 %v1489_v33 }
 0x373   : > { %v1279_v34 = vpop.f32.mrf.mxu0 }
 0x374   : > { %v1280_v36 = vadd.f32 %v3230_v62, %v1279_v34 }
 0x375   : > { %v1414_v39 = vpop.f32.mrf.mxu1 }
 0x376   : > { %v1323_v8 = vmax.f32 %v1280_v36, 0.0  ;;  %v1415_v3 = vadd.f32 %v3279_v37, %v1414_v39 }
 0x378   : > { %v1490_v40 = vmax.f32 %v1415_v3, 0.0  ;;  %1461 = vmatmul.f32.gmra.mxu1 %v1323_v8 }
 0x37a   : > { %1596 = vmatmul.f32.gmra.mxu2 %v1490_v40 }
 0x37b   : > { %v1282_v42 = vpop.f32.mrf.mxu0 }
 0x37c   : > { %v1283_v1 = vadd.f32 %v3230_v62, %v1282_v42 }
 0x37d   : > { %v1417_v56 = vpop.f32.mrf.mxu1 }
 0x37e   : > { %v1324_v43 = vmax.f32 %v1283_v1, 0.0  ;;  %v1418_v44 = vadd.f32 %v3279_v37, %v1417_v56 }
 0x380   : > { %v1491_v45 = vmax.f32 %v1418_v44, 0.0  ;;  %1464 = vmatmul.f32.gmra.mxu1 %v1324_v43 }
 0x382   : > { %1599 = vmatmul.f32.gmra.mxu2 %v1491_v45 }
 0x383   : > { %v1285_v26 = vpop.f32.mrf.mxu0 }
 0x384   : > { %v1286_v48 = vadd.f32 %v3230_v62, %v1285_v26 }
 0x385   : > { %v1420_v49 = vpop.f32.mrf.mxu1 }
 0x386   : > { %v1325_v50 = vmax.f32 %v1286_v48, 0.0  ;;  %v1421_v14 = vadd.f32 %v3279_v37, %v1420_v49 }
 0x388   : > { %v1492_v51 = vmax.f32 %v1421_v14, 0.0  ;;  %1467 = vmatmul.f32.gmra.mxu1 %v1325_v50 }
 0x38a   : > { %1602 = vmatmul.f32.gmra.mxu2 %v1492_v51 }
 0x38b   : > { %v1288_v52 = vpop.f32.mrf.mxu0 }
 0x38c   : > { %v1289_v54 = vadd.f32 %v3230_v62, %v1288_v52 }
 0x38d   : > { %v1423_v55 = vpop.f32.mrf.mxu1 }
 0x38e   : > { %v1326_v57 = vmax.f32 %v1289_v54, 0.0  ;;  %v1424_v58 = vadd.f32 %v3279_v37, %v1423_v55 }
 0x390   : > { %v1493_v59 = vmax.f32 %v1424_v58, 0.0  ;;  %1470 = vmatmul.f32.gmra.mxu1 %v1326_v57 }
 0x392   : > { %1605 = vmatmul.f32.gmra.mxu2 %v1493_v59 }
 0x393   : > { %v1291_v19 = vpop.f32.mrf.mxu0 }
 0x394   : > { %v1292_v61 = vadd.f32 %v3230_v62, %v1291_v19 }
 0x395   : > { %v1426_v63 = vpop.f32.mrf.mxu1 }
 0x396   : > { %v1327_v0 = vmax.f32 %v1292_v61, 0.0  ;;  %v1427_v2 = vadd.f32 %v3279_v37, %v1426_v63 }
 0x398   : > { %v1494_v4 = vmax.f32 %v1427_v2, 0.0  ;;  %1473 = vmatmul.f32.gmra.mxu1 %v1327_v0 }
 0x39a   : > { %1608 = vmatmul.f32.gmra.mxu2 %v1494_v4 }
 0x39b   : > { %v1294_v24 = vpop.f32.mrf.mxu0 }
 0x39c   : > { %v1295_v38 = vadd.f32 %v3230_v62, %v1294_v24 }
 0x39d   : > { %v1429_v5 = vpop.f32.mrf.mxu1 }
 0x39e   : > { %v1328_v6 = vmax.f32 %v1295_v38, 0.0  ;;  %v1430_v7 = vadd.f32 %v3279_v37, %v1429_v5 }
 0x3a0   : > { %v1495_v9 = vmax.f32 %v1430_v7, 0.0  ;;  %1476 = vmatmul.f32.gmra.mxu1 %v1328_v6 }
 0x3a2   : > { %1611 = vmatmul.f32.gmra.mxu2 %v1495_v9 }
 0x3a5   : > { %v1432_v10 = vpop.f32.mrf.mxu1 }
 0x3a6   : > { %v1433_v12 = vadd.f32 %v3279_v37, %v1432_v10 }
 0x3a8   : > { %v1496_v30 = vmax.f32 %v1433_v12, 0.0 }
 0x3aa   : > { %1614 = vmatmul.f32.gmra.mxu2 %v1496_v30 }
 0x3ad   : > { %v1435_v62 = vpop.f32.mrf.mxu1  ;;  %v1567_v15 = vpop.f32.mrf.mxu2 }
 0x3ae   : > { %v1436_v16 = vadd.f32 %v3279_v37, %v1435_v62  ;;  %v1568_v35 = vadd.f32 %v3319_v46, %v1567_v15 }
 0x3b0   : > { %v1497_v17 = vmax.f32 %v1436_v16, 0.0  ;;  %v3326_v18 = vsel %vm1665_vm1, %v1568_v35, -inf }
 0x3b1   : > { %1698 = vmax.xlane.f32.xlu0 %v3326_v18 }
 0x3b2   : > { %1617 = vmatmul.f32.gmra.mxu2 %v1497_v17 }
 0x3b5   : > { %v1438_v20 = vpop.f32.mrf.mxu1  ;;  %v1570_v53 = vpop.f32.mrf.mxu2 }
 0x3b6   : > { %v1439_v21 = vadd.f32 %v3279_v37, %v1438_v20  ;;  %v1571_v22 = vadd.f32 %v3319_v46, %v1570_v53 }
 0x3b8   : > { %v1498_v41 = vmax.f32 %v1439_v21, 0.0  ;;  %v3333_v23 = vsel %vm1665_vm1, %v1571_v22, -inf }
 0x3b9   : > { %1700 = vmax.xlane.f32.xlu0 %v3333_v23 }
 0x3ba   : > { %1620 = vmatmul.f32.gmra.mxu2 %v1498_v41 }
 0x3bd   : > { %v1441_v25 = vpop.f32.mrf.mxu1  ;;  %v1573_v27 = vpop.f32.mrf.mxu2 }
 0x3be   : > { %v1442_v28 = vadd.f32 %v3279_v37, %v1441_v25  ;;  %v1574_v29 = vadd.f32 %v3319_v46, %v1573_v27 }
 0x3c0   : > { %v1499_v31 = vmax.f32 %v1442_v28, 0.0  ;;  %v3340_v60 = vsel %vm1665_vm1, %v1574_v29, -inf }
 0x3c1   : > { %1702 = vmax.xlane.f32.xlu1 %v3340_v60 }
 0x3c2   : > { %1623 = vmatmul.f32.gmra.mxu2 %v1499_v31 }
 0x3c5   : > { %v1444_v32 = vpop.f32.mrf.mxu1  ;;  %v1576_v47 = vpop.f32.mrf.mxu2 }
 0x3c6   : > { %v1445_v33 = vadd.f32 %v3279_v37, %v1444_v32  ;;  %v1577_v34 = vadd.f32 %v3319_v46, %v1576_v47 }
 0x3c8   : > { %v1500_v36 = vmax.f32 %v1445_v33, 0.0  ;;  %v3347_v39 = vsel %vm1665_vm1, %v1577_v34, -inf }
 0x3c9   : > { %1704 = vmax.xlane.f32.xlu1 %v3347_v39 }
 0x3ca   : > { %1626 = vmatmul.f32.gmra.mxu2 %v1500_v36 }
 0x3cd   : > { %v1447_v8 = vpop.f32.mrf.mxu1  ;;  %v1579_v3 = vpop.f32.mrf.mxu2 }
 0x3ce   : > { %v1448_v40 = vadd.f32 %v3279_v37, %v1447_v8  ;;  %v1580_v42 = vadd.f32 %v3319_v46, %v1579_v3 }
 0x3d0   : > { %v1501_v1 = vmax.f32 %v1448_v40, 0.0  ;;  %v3354_v56 = vsel %vm1665_vm1, %v1580_v42, -inf }
 0x3d1   : > { %1706 = vmax.xlane.f32.xlu2 %v3354_v56 }
 0x3d2   : > { %1629 = vmatmul.f32.gmra.mxu2 %v1501_v1 }
 0x3d5   : > { %v1450_v43 = vpop.f32.mrf.mxu1  ;;  %v1582_v44 = vpop.f32.mrf.mxu2 }
 0x3d6   : > { %v1451_v45 = vadd.f32 %v3279_v37, %v1450_v43  ;;  %v1583_v26 = vadd.f32 %v3319_v46, %v1582_v44 }
 0x3d8   : > { %v1502_v48 = vmax.f32 %v1451_v45, 0.0  ;;  %v3361_v49 = vsel %vm1665_vm1, %v1583_v26, -inf }
 0x3d9   : > { %1708 = vmax.xlane.f32.xlu2 %v3361_v49 }
 0x3da   : > { %1632 = vmatmul.f32.gmra.mxu2 %v1502_v48 }
 0x3dd   : > { %v1453_v50 = vpop.f32.mrf.mxu1  ;;  %v1585_v14 = vpop.f32.mrf.mxu2 }
 0x3de   : > { %v1454_v51 = vadd.f32 %v3279_v37, %v1453_v50  ;;  %v1586_v52 = vadd.f32 %v3319_v46, %v1585_v14 }
 0x3e0   : > { %v1503_v54 = vmax.f32 %v1454_v51, 0.0  ;;  %v3368_v55 = vsel %vm1665_vm1, %v1586_v52, -inf }
 0x3e1   : > { %1710 = vmax.xlane.f32.xlu0 %v3368_v55 }
 0x3e2   : > { %1635 = vmatmul.f32.gmra.mxu2 %v1503_v54 }
 0x3e5   : > { %v1456_v57 = vpop.f32.mrf.mxu1  ;;  %v1588_v58 = vpop.f32.mrf.mxu2 }
 0x3e6   : > { %v1457_v59 = vadd.f32 %v3279_v37, %v1456_v57  ;;  %v1589_v19 = vadd.f32 %v3319_v46, %v1588_v58 }
 0x3e8   : > { %v1504_v61 = vmax.f32 %v1457_v59, 0.0  ;;  %v3375_v63 = vsel %vm1665_vm1, %v1589_v19, -inf }
 0x3e9   : > { %1712 = vmax.xlane.f32.xlu1 %v3375_v63 }
 0x3ea   : > { %1638 = vmatmul.f32.gmra.mxu2 %v1504_v61 }
 0x3ed   : > { %v1459_v0 = vpop.f32.mrf.mxu1  ;;  %v1591_v2 = vpop.f32.mrf.mxu2 }
 0x3ee   : > { %v1460_v4 = vadd.f32 %v3279_v37, %v1459_v0  ;;  %v1592_v24 = vadd.f32 %v3319_v46, %v1591_v2 }
 0x3f0   : > { %v1505_v38 = vmax.f32 %v1460_v4, 0.0  ;;  %v3382_v5 = vsel %vm1665_vm1, %v1592_v24, -inf }
 0x3f1   : > { %1714 = vmax.xlane.f32.xlu2 %v3382_v5 }
 0x3f2   : > { %1641 = vmatmul.f32.gmra.mxu2 %v1505_v38 }
 0x3f5   : > { %v1462_v6 = vpop.f32.mrf.mxu1  ;;  %v1594_v7 = vpop.f32.mrf.mxu2 }
 0x3f6   : > { %v1463_v9 = vadd.f32 %v3279_v37, %v1462_v6  ;;  %v1595_v10 = vadd.f32 %v3319_v46, %v1594_v7 }
 0x3f8   : > { %v1506_v11 = vmax.f32 %v1463_v9, 0.0  ;;  %v3389_v12 = vsel %vm1665_vm1, %v1595_v10, -inf }
 0x3f9   : > { %1716 = vmax.xlane.f32.xlu0 %v3389_v12 }
 0x3fa   : > { %1644 = vmatmul.f32.gmra.mxu2 %v1506_v11 }
 0x3fd   : > { %v1465_v30 = vpop.f32.mrf.mxu1  ;;  %v1597_v62 = vpop.f32.mrf.mxu2 }
 0x3fe   : > { %v1466_v15 = vadd.f32 %v3279_v37, %v1465_v30  ;;  %v1598_v16 = vadd.f32 %v3319_v46, %v1597_v62 }
 0x400   : > { %v1507_v35 = vmax.f32 %v1466_v15, 0.0  ;;  %v3396_v17 = vsel %vm1665_vm1, %v1598_v16, -inf }
 0x401   : > { %1718 = vmax.xlane.f32.xlu1 %v3396_v17 }
 0x402   : > { %1647 = vmatmul.f32.gmra.mxu2 %v1507_v35 }
 0x405   : > { %v1468_v20 = vpop.f32.mrf.mxu1  ;;  %v1600_v53 = vpop.f32.mrf.mxu2 }
 0x406   : > { %v1469_v21 = vadd.f32 %v3279_v37, %v1468_v20  ;;  %v1601_v22 = vadd.f32 %v3319_v46, %v1600_v53 }
 0x408   : > { %v1508_v41 = vmax.f32 %v1469_v21, 0.0  ;;  %v3403_v25 = vsel %vm1665_vm1, %v1601_v22, -inf }
 0x409   : > { %1720 = vmax.xlane.f32.xlu2 %v3403_v25 }
 0x40a   : > { %1650 = vmatmul.f32.gmra.mxu2 %v1508_v41 }
 0x40d   : > { %v1471_v27 = vpop.f32.mrf.mxu1  ;;  %v1603_v28 = vpop.f32.mrf.mxu2 }
 0x40e   : > { %v1472_v29 = vadd.f32 %v3279_v37, %v1471_v27  ;;  %v1604_v31 = vadd.f32 %v3319_v46, %v1603_v28 }
 0x410   : > { %v1509_v32 = vmax.f32 %v1472_v29, 0.0  ;;  %v3410_v47 = vsel %vm1665_vm1, %v1604_v31, -inf }
 0x411   : > { %1722 = vmax.xlane.f32.xlu0 %v3410_v47 }
 0x412   : > { %1653 = vmatmul.f32.gmra.mxu2 %v1509_v32 }
 0x415   : > { %v1474_v33 = vpop.f32.mrf.mxu1  ;;  %v1606_v34 = vpop.f32.mrf.mxu2 }
 0x416   : > { %v1475_v36 = vadd.f32 %v3279_v37, %v1474_v33  ;;  %v1607_v8 = vadd.f32 %v3319_v46, %v1606_v34 }
 0x418   : > { %v1510_v3 = vmax.f32 %v1475_v36, 0.0  ;;  %v3417_v40 = vsel %vm1665_vm1, %v1607_v8, -inf }
 0x419   : > { %1724 = vmax.xlane.f32.xlu1 %v3417_v40 }
 0x41a   : > { %1656 = vmatmul.f32.gmra.mxu2 %v1510_v3 }
 0x41d   : > { %v1477_v42 = vpop.f32.mrf.mxu1  ;;  %v1609_v1 = vpop.f32.mrf.mxu2 }
 0x41e   : > { %v1478_v43 = vadd.f32 %v3279_v37, %v1477_v42  ;;  %v1610_v44 = vadd.f32 %v3319_v46, %v1609_v1 }
 0x420   : > { %v1511_v45 = vmax.f32 %v1478_v43, 0.0  ;;  %v3424_v26 = vsel %vm1665_vm1, %v1610_v44, -inf }
 0x421   : > { %1726 = vmax.xlane.f32.xlu2 %v3424_v26 }
 0x422   : > { %1659 = vmatmul.f32.vlgmr.msra.gmra.mxu3 %v1511_v45 }
 0x424   : > { %v1699_v48 = vpop.xlane.xlu0 %1698 }
 0x425   : > { %v1762_v50 = vsub.f32 %v3326_v18, %v1699_v48  ;;  %v1612_v14 = vpop.f32.mrf.mxu2 }
 0x426   : > { %v1613_v51 = vadd.f32 %v3319_v46, %v1612_v14 }
 0x427   : > { %v1794_v52 = vmul.f32 1.442695, %v1762_v50 }
 0x428   : > { %v3431_v37 = vsel %vm1665_vm1, %v1613_v51, -inf }
 0x429   : > { %2564 = vpow2.f32 %v1794_v52  ;;  %1728 = vmax.xlane.f32.xlu0 %v3431_v37 }
 0x42c   : > { %v1701_v54 = vpop.xlane.xlu0 %1700 }
 0x42d   : > { %v1763_v57 = vsub.f32 %v3333_v23, %v1701_v54  ;;  %v1615_v58 = vpop.f32.mrf.mxu2 }
 0x42e   : > { %v1616_v59 = vadd.f32 %v3319_v46, %v1615_v58 }
 0x42f   : > { %v3436_v19 = vpop.eup %2564  ;;  %v1796_v18 = vmul.f32 1.442695, %v1763_v57 }
 0x430   : > { %1858 = vadd.xlane.f32.xlu2 %v3436_v19  ;;  %v3441_v61 = vsel %vm1665_vm1, %v1616_v59, -inf }
 0x431   : > { %2566 = vpow2.f32 %v1796_v18  ;;  %1730 = vmax.xlane.f32.xlu1 %v3441_v61 }
 0x434   : > { %v1703_v0 = vpop.xlane.xlu1 %1702 }
 0x435   : > { %v1764_v2 = vsub.f32 %v3340_v60, %v1703_v0  ;;  %v1618_v4 = vpop.f32.mrf.mxu2 }
 0x436   : > { %v1619_v23 = vadd.f32 %v3319_v46, %v1618_v4 }
 0x437   : > { %v3446_v24 = vpop.eup %2566  ;;  %v1798_v38 = vmul.f32 1.442695, %v1764_v2 }
 0x438   : > { %1860 = vadd.xlane.f32.xlu0 %v3446_v24  ;;  %v3451_v6 = vsel %vm1665_vm1, %v1619_v23, -inf }
 0x439   : > { %2568 = vpow2.f32 %v1798_v38  ;;  %1732 = vmax.xlane.f32.xlu2 %v3451_v6 }
 0x43c   : > { %v1705_v7 = vpop.xlane.xlu1 %1704 }
 0x43d   : > { %v1765_v9 = vsub.f32 %v3347_v39, %v1705_v7  ;;  %v1621_v10 = vpop.f32.mrf.mxu2 }
 0x43e   : > { %v1622_v60 = vadd.f32 %v3319_v46, %v1621_v10 }
 0x43f   : > { %v3456_v11 = vpop.eup %2568  ;;  %v1800_v30 = vmul.f32 1.442695, %v1765_v9 }
 0x440   : > { %1862 = vadd.xlane.f32.xlu1 %v3456_v11  ;;  %v3461_v62 = vsel %vm1665_vm1, %v1622_v60, -inf }
 0x441   : > { %2570 = vpow2.f32 %v1800_v30  ;;  %1734 = vmax.xlane.f32.xlu0 %v3461_v62 }
 0x444   : > { %v1707_v15 = vpop.xlane.xlu2 %1706 }
 0x445   : > { %v1766_v16 = vsub.f32 %v3354_v56, %v1707_v15  ;;  %v1624_v35 = vpop.f32.mrf.mxu2 }
 0x446   : > { %v1625_v39 = vadd.f32 %v3319_v46, %v1624_v35 }
 0x447   : > { %v3466_v20 = vpop.eup %2570  ;;  %v1802_v53 = vmul.f32 1.442695, %v1766_v16 }
 0x448   : > { %1864 = vadd.xlane.f32.xlu2 %v3466_v20  ;;  %v3471_v21 = vsel %vm1665_vm1, %v1625_v39, -inf }
 0x449   : > { %2572 = vpow2.f32 %v1802_v53  ;;  %1736 = vmax.xlane.f32.xlu1 %v3471_v21 }
 0x44c   : > { %v1709_v22 = vpop.xlane.xlu2 %1708 }
 0x44d   : > { %v1767_v41 = vsub.f32 %v3361_v49, %v1709_v22  ;;  %v1627_v27 = vpop.f32.mrf.mxu2 }
 0x44e   : > { %v1628_v56 = vadd.f32 %v3319_v46, %v1627_v27 }
 0x44f   : > { %v3476_v28 = vpop.eup %2572  ;;  %v1804_v29 = vmul.f32 1.442695, %v1767_v41 }
 0x450   : > { %1866 = vadd.xlane.f32.xlu0 %v3476_v28  ;;  %v3481_v31 = vsel %vm1665_vm1, %v1628_v56, -inf }
 0x451   : > { %2574 = vpow2.f32 %v1804_v29  ;;  %1738 = vmax.xlane.f32.xlu2 %v3481_v31 }
 0x454   : > { %v1711_v32 = vpop.xlane.xlu0 %1710 }
 0x455   : > { %v1768_v33 = vsub.f32 %v3368_v55, %v1711_v32  ;;  %v1630_v34 = vpop.f32.mrf.mxu2 }
 0x456   : > { %v1631_v49 = vadd.f32 %v3319_v46, %v1630_v34 }
 0x457   : > { %v3486_v36 = vpop.eup %2574  ;;  %v1806_v8 = vmul.f32 1.442695, %v1768_v33 }
 0x458   : > { %1868 = vadd.xlane.f32.xlu1 %v3486_v36  ;;  %v3491_v3 = vsel %vm1665_vm1, %v1631_v49, -inf }
 0x459   : > { %2576 = vpow2.f32 %v1806_v8  ;;  %1740 = vmax.xlane.f32.xlu0 %v3491_v3 }
 0x45c   : > { %v1713_v42 = vpop.xlane.xlu1 %1712 }
 0x45d   : > { %v1769_v1 = vsub.f32 %v3375_v63, %v1713_v42  ;;  %v1633_v43 = vpop.f32.mrf.mxu2 }
 0x45e   : > { %v1634_v55 = vadd.f32 %v3319_v46, %v1633_v43 }
 0x45f   : > { %v3496_v44 = vpop.eup %2576  ;;  %v1808_v45 = vmul.f32 1.442695, %v1769_v1 }
 0x460   : > { %1870 = vadd.xlane.f32.xlu2 %v3496_v44  ;;  %v3501_v48 = vsel %vm1665_vm1, %v1634_v55, -inf }
 0x461   : > { %2578 = vpow2.f32 %v1808_v45  ;;  %1742 = vmax.xlane.f32.xlu1 %v3501_v48 }
 0x464   : > { %v1715_v50 = vpop.xlane.xlu2 %1714 }
 0x465   : > { %v1770_v14 = vsub.f32 %v3382_v5, %v1715_v50  ;;  %v1636_v51 = vpop.f32.mrf.mxu2 }
 0x466   : > { %v1637_v63 = vadd.f32 %v3319_v46, %v1636_v51 }
 0x467   : > { %v3506_v52 = vpop.eup %2578  ;;  %v1810_v54 = vmul.f32 1.442695, %v1770_v14 }
 0x468   : > { %1872 = vadd.xlane.f32.xlu0 %v3506_v52  ;;  %v3511_v57 = vsel %vm1665_vm1, %v1637_v63, -inf }
 0x469   : > { %2580 = vpow2.f32 %v1810_v54  ;;  %1744 = vmax.xlane.f32.xlu2 %v3511_v57 }
 0x46c   : > { %v1717_v58 = vpop.xlane.xlu0 %1716 }
 0x46d   : > { %v1771_v59 = vsub.f32 %v3389_v12, %v1717_v58  ;;  %v1639_v18 = vpop.f32.mrf.mxu2 }
 0x46e   : > { %v1640_v5 = vadd.f32 %v3319_v46, %v1639_v18 }
 0x46f   : > { %v3516_v0 = vpop.eup %2580  ;;  %v1812_v2 = vmul.f32 1.442695, %v1771_v59 }
 0x470   : > { %1874 = vadd.xlane.f32.xlu1 %v3516_v0  ;;  %v3521_v4 = vsel %vm1665_vm1, %v1640_v5, -inf }
 0x471   : > { %2582 = vpow2.f32 %v1812_v2  ;;  %1746 = vmax.xlane.f32.xlu0 %v3521_v4 }
 0x474   : > { %v1719_v23 = vpop.xlane.xlu1 %1718 }
 0x475   : > { %v1772_v38 = vsub.f32 %v3396_v17, %v1719_v23  ;;  %v1642_v7 = vpop.f32.mrf.mxu2 }
 0x476   : > { %v1643_v12 = vadd.f32 %v3319_v46, %v1642_v7 }
 0x477   : > { %v3526_v9 = vpop.eup %2582  ;;  %v1814_v10 = vmul.f32 1.442695, %v1772_v38 }
 0x478   : > { %1876 = vadd.xlane.f32.xlu2 %v3526_v9  ;;  %v3531_v60 = vsel %vm1665_vm1, %v1643_v12, -inf }
 0x479   : > { %2584 = vpow2.f32 %v1814_v10  ;;  %1748 = vmax.xlane.f32.xlu1 %v3531_v60 }
 0x47c   : > { %v1721_v32 = vpop.xlane.xlu2 %1720 }
 0x47d   : > { %v1645_v30 = vpop.f32.mrf.mxu2 }
 0x47e   : > { %v1646_v15 = vadd.f32 %v3319_v46, %v1645_v30 }
 0x47f   : > { %v3535_v16 = vpop.eup %2584 }
 0x480   : > { %1878 = vadd.xlane.f32.xlu0 %v3535_v16  ;;  %v3540_v17 = vsel %vm1665_vm1, %v1646_v15, -inf }
 0x481   : > { %1750 = vmax.xlane.f32.xlu2 %v3540_v17 }
 0x484   : > { %v1723_v27 = vpop.xlane.xlu0 %1722 }
 0x485   : > { %v1648_v35 = vpop.f32.mrf.mxu2  ;;  %v1774_v29 = vsub.f32 %v3410_v47, %v1723_v27 }
 0x486   : > { %v1649_v39 = vadd.f32 %v3319_v46, %v1648_v35 }
 0x487   : > { %v1818_v34 = vmul.f32 1.442695, %v1774_v29 }
 0x488   : > { %v3546_v53 = vsel %vm1665_vm1, %v1649_v39, -inf }
 0x489   : > { %1752 = vmax.xlane.f32.xlu0 %v3546_v53  ;;  %2586 = vpow2.f32 %v1818_v34 }
 0x48c   : > { %v1725_v8 = vpop.xlane.xlu1 %1724 }
 0x48d   : > { %v1651_v22 = vpop.f32.mrf.mxu2  ;;  %v1775_v1 = vsub.f32 %v3417_v40, %v1725_v8  ;;  %v1773_v40 = vsub.f32 %v3403_v25, %v1721_v32 }
 0x48e   : > { %v1652_v41 = vadd.f32 %v3319_v46, %v1651_v22 }
 0x48f   : > { %v1820_v50 = vmul.f32 1.442695, %v1775_v1  ;;  %v3565_v63 = vpop.eup %2586  ;;  %v1816_v5 = vmul.f32 1.442695, %v1773_v40 }
 0x490   : > { %v3552_v56 = vsel %vm1665_vm1, %v1652_v41, -inf }
 0x491   : > { %1754 = vmax.xlane.f32.xlu1 %v3552_v56 }
 0x494   : > { %v1727_v43 = vpop.xlane.xlu2 %1726 }
 0x495   : > { %v1654_v33 = vpop.f32.mrf.mxu2 }
 0x496   : > { %v1655_v49 = vadd.f32 %v3319_v46, %v1654_v33 }
 0x498   : > { %v3559_v42 = vsel %vm1665_vm1, %v1655_v49, -inf }
 0x499   : > { %1756 = vmax.xlane.f32.xlu2 %v3559_v42 }
 0x49c   : > { %v1729_v55 = vpop.xlane.xlu0 %1728 }
 0x49d   : > { %v1777_v47 = vsub.f32 %v3431_v37, %v1729_v55  ;;  %v1657_v45 = vpop.f32.mrf.mxu2 }
 0x49e   : > { %v1658_v14 = vadd.f32 %v3319_v46, %v1657_v45 }
 0x49f   : > { %v1824_v51 = vmul.f32 1.442695, %v1777_v47 }
 0x4a0   : > { %v3569_v54 = vsel %vm1665_vm1, %v1658_v14, -inf }
 0x4a1   : > { %2588 = vpow2.f32 %v1824_v51  ;;  %1758 = vmax.xlane.f32.xlu0 %v3569_v54  ;;  %1882 = vadd.xlane.f32.xlu2 %v3565_v63 }
 0x4a2   : > { %2590 = vpow2.f32 %v1820_v50 }
 0x4a3   : > { %v1859_v37 = vpop.xlane.xlu2 %1858 }
 0x4a4   : > { %2592 = vrcp.f32 %v1859_v37  ;;  %v1731_v58 = vpop.xlane.xlu1 %1730 }
 0x4a5   : > { %v1778_v59 = vsub.f32 %v3441_v61, %v1731_v58  ;;  %v1660_v18 = vpop.f32.mrf.mxu3 }
 0x4a6   : > { %v1661_v2 = vadd.f32 %v3319_v46, %v1660_v18  ;;  %v1776_v46 = vsub.f32 %v3424_v26, %v1727_v43 }
 0x4a7   : > { %v3577_v23 = vpop.eup %2588  ;;  %v1826_v38 = vmul.f32 1.442695, %v1778_v59 }
 0x4a8   : > { %v3581_v7 = vpop.eup %2590  ;;  %v3585_v25 = vsel %vm1665_vm1, %v1661_v2, -inf  ;;  %v1822_v13 = vmul.f32 1.442695, %v1776_v46 }
 0x4a9   : > { %2594 = vpow2.f32 %v1826_v38  ;;  %1760 = vmax.xlane.f32.xlu1 %v3585_v25  ;;  %1884 = vadd.xlane.f32.xlu0 %v3581_v7 }
 0x4aa   : > { %v2593_v61 = vpop.eup %2592  ;;  %2596 = vpow2.f32 %v1816_v5  ;;  %1888 = vadd.xlane.f32.xlu2 %v3577_v23 }
 0x4ab   : > { %v1954_v12 = vmul.f32 %v2593_v61, %v3436_v19  ;;  %v1861_v10 = vpop.xlane.xlu0 %1860 }
 0x4ac   : > { %2598 = vrcp.f32 %v1861_v10  ;;  %v1733_v15 = vpop.xlane.xlu2 %1732 }
 0x4ad   : > { %1986 = vst [vmem:[%s3592_s5] sm:$0xff] %v1954_v12  ;;  %2600 = vpow2.f32 %v1822_v13  ;;  %v1779_v19 = vsub.f32 %v3451_v6, %v1733_v15 }
 0x4af   : > { %v3595_v30 = vpop.eup %2594  ;;  %v1828_v29 = vmul.f32 1.442695, %v1779_v19 }
 0x4b0   : > { %v3597_v35 = vpop.eup %2596 }
 0x4b1   : > { %1880 = vadd.xlane.f32.xlu1 %v3597_v35  ;;  %1890 = vadd.xlane.f32.xlu0 %v3595_v30 }
 0x4b2   : > { %v2599_v26 = vpop.eup %2598 }
 0x4b3   : > { %v1955_v39 = vmul.f32 %v2599_v26, %v3446_v24  ;;  %v1863_v22 = vpop.xlane.xlu1 %1862  ;;  %v3605_v33 = vpop.eup %2600 }
 0x4b4   : > { %2602 = vrcp.f32 %v1863_v22  ;;  %v1735_v41 = vpop.xlane.xlu0 %1734 }
 0x4b5   : > { %1987 = vst [vmem:[%s3592_s5 + $0x8] sm:$0xff] %v1955_v39  ;;  %v1780_v27 = vsub.f32 %v3461_v62, %v1735_v41 }
 0x4b7   : > { %v1830_v32 = vmul.f32 1.442695, %v1780_v27 }
 0x4b9   : > { %2604 = vpow2.f32 %v1830_v32  ;;  %1886 = vadd.xlane.f32.xlu1 %v3605_v33 }
 0x4ba   : > { %v2603_v34 = vpop.eup %2602  ;;  %2606 = vpow2.f32 %v1828_v29 }
 0x4bb   : > { %v1956_v6 = vmul.f32 %v2603_v34, %v3456_v11  ;;  %v1865_v49 = vpop.xlane.xlu2 %1864 }
 0x4bc   : > { %2608 = vrcp.f32 %v1865_v49  ;;  %v1737_v24 = vpop.xlane.xlu1 %1736 }
 0x4bd   : > { %1988 = vst [vmem:[%s3592_s5 + $0x10] sm:$0xff] %v1956_v6  ;;  %v1781_v8 = vsub.f32 %v3471_v21, %v1737_v24 }
 0x4bf   : > { %v3611_v1 = vpop.eup %2604  ;;  %v1832_v62 = vmul.f32 1.442695, %v1781_v8 }
 0x4c0   : > { %v3613_v43 = vpop.eup %2606  ;;  %1894 = vadd.xlane.f32.xlu2 %v3611_v1 }
 0x4c1   : > { %2610 = vpow2.f32 %v1832_v62  ;;  %1892 = vadd.xlane.f32.xlu1 %v3613_v43 }
 0x4c2   : > { %v2609_v55 = vpop.eup %2608 }
 0x4c3   : > { %v1957_v11 = vmul.f32 %v2609_v55, %v3466_v20  ;;  %v1867_v47 = vpop.xlane.xlu0 %1866 }
 0x4c4   : > { %2612 = vrcp.f32 %v1867_v47  ;;  %v1739_v45 = vpop.xlane.xlu2 %1738 }
 0x4c5   : > { %1989 = vst [vmem:[%s3592_s5 + $0x18] sm:$0xff] %v1957_v11  ;;  %v1782_v21 = vsub.f32 %v3481_v31, %v1739_v45 }
 0x4c7   : > { %v3620_v50 = vpop.eup %2610  ;;  %v1834_v14 = vmul.f32 1.442695, %v1782_v21 }
 0x4c8   : > { %1896 = vadd.xlane.f32.xlu0 %v3620_v50 }
 0x4c9   : > { %2614 = vpow2.f32 %v1834_v14 }
 0x4ca   : > { %v2613_v51 = vpop.eup %2612 }
 0x4cb   : > { %v1958_v40 = vmul.f32 %v2613_v51, %v3476_v28  ;;  %v1869_v37 = vpop.xlane.xlu1 %1868 }
 0x4cc   : > { %2616 = vrcp.f32 %v1869_v37  ;;  %v1741_v58 = vpop.xlane.xlu0 %1740 }
 0x4cd   : > { %1990 = vst [vmem:[%s3592_s5 + $0x20] sm:$0xff] %v1958_v40  ;;  %v1783_v20 = vsub.f32 %v3491_v3, %v1741_v58 }
 0x4cf   : > { %v3626_v59 = vpop.eup %2614  ;;  %v1836_v18 = vmul.f32 1.442695, %v1783_v20 }
 0x4d0   : > { %1898 = vadd.xlane.f32.xlu1 %v3626_v59 }
 0x4d1   : > { %2618 = vpow2.f32 %v1836_v18 }
 0x4d2   : > { %v2617_v31 = vpop.eup %2616 }
 0x4d3   : > { %v1959_v5 = vmul.f32 %v2617_v31, %v3486_v36  ;;  %v1871_v2 = vpop.xlane.xlu2 %1870 }
 0x4d4   : > { %2620 = vrcp.f32 %v1871_v2  ;;  %v1743_v38 = vpop.xlane.xlu1 %1742 }
 0x4d5   : > { %1991 = vst [vmem:[%s3592_s5 + $0x28] sm:$0xff] %v1959_v5  ;;  %v1784_v28 = vsub.f32 %v3501_v48, %v1743_v38 }
 0x4d7   : > { %v3632_v61 = vpop.eup %2618  ;;  %v1838_v46 = vmul.f32 1.442695, %v1784_v28 }
 0x4d8   : > { %1900 = vadd.xlane.f32.xlu2 %v3632_v61 }
 0x4d9   : > { %2622 = vpow2.f32 %v1838_v46 }
 0x4da   : > { %v2621_v3 = vpop.eup %2620 }
 0x4db   : > { %v1960_v12 = vmul.f32 %v2621_v3, %v3496_v44  ;;  %v1873_v10 = vpop.xlane.xlu0 %1872 }
 0x4dc   : > { %2624 = vrcp.f32 %v1873_v10  ;;  %v1745_v13 = vpop.xlane.xlu2 %1744 }
 0x4dd   : > { %1992 = vst [vmem:[%s3592_s5 + $0x30] sm:$0xff] %v1960_v12  ;;  %v1785_v36 = vsub.f32 %v3511_v57, %v1745_v13 }
 0x4df   : > { %v3638_v15 = vpop.eup %2622  ;;  %v1840_v26 = vmul.f32 1.442695, %v1785_v36 }
 0x4e0   : > { %1902 = vadd.xlane.f32.xlu0 %v3638_v15 }
 0x4e1   : > { %2626 = vpow2.f32 %v1840_v26 }
 0x4e2   : > { %v2625_v48 = vpop.eup %2624 }
 0x4e3   : > { %v1961_v19 = vmul.f32 %v2625_v48, %v3506_v52  ;;  %v1875_v39 = vpop.xlane.xlu1 %1874 }
 0x4e4   : > { %2628 = vrcp.f32 %v1875_v39  ;;  %v1747_v22 = vpop.xlane.xlu0 %1746 }
 0x4e5   : > { %1993 = vst [vmem:[%s3592_s5 + $0x38] sm:$0xff] %v1961_v19  ;;  %v1786_v44 = vsub.f32 %v3521_v4, %v1747_v22 }
 0x4e7   : > { %v3644_v41 = vpop.eup %2626  ;;  %v1842_v27 = vmul.f32 1.442695, %v1786_v44 }
 0x4e8   : > { %1904 = vadd.xlane.f32.xlu1 %v3644_v41 }
 0x4e9   : > { %2630 = vpow2.f32 %v1842_v27 }
 0x4ea   : > { %v2629_v57 = vpop.eup %2628 }
 0x4eb   : > { %v1962_v29 = vmul.f32 %v2629_v57, %v3516_v0  ;;  %v1877_v32 = vpop.xlane.xlu2 %1876 }
 0x4ec   : > { %2632 = vrcp.f32 %v1877_v32  ;;  %v1749_v34 = vpop.xlane.xlu1 %1748 }
 0x4ed   : > { %1994 = vst [vmem:[%s3592_s5 + $0x40] sm:$0xff] %v1962_v29  ;;  %v1787_v52 = vsub.f32 %v3531_v60, %v1749_v34 }
 0x4ef   : > { %v3650_v6 = vpop.eup %2630  ;;  %v1844_v49 = vmul.f32 1.442695, %v1787_v52 }
 0x4f0   : > { %1906 = vadd.xlane.f32.xlu2 %v3650_v6 }
 0x4f1   : > { %2634 = vpow2.f32 %v1844_v49 }
 0x4f2   : > { %v2633_v4 = vpop.eup %2632 }
 0x4f3   : > { %v1963_v24 = vmul.f32 %v2633_v4, %v3526_v9  ;;  %v1879_v8 = vpop.xlane.xlu0 %1878 }
 0x4f4   : > { %2636 = vrcp.f32 %v1879_v8  ;;  %v1751_v62 = vpop.xlane.xlu2 %1750 }
 0x4f5   : > { %1995 = vst [vmem:[%s3592_s5 + $0x48] sm:$0xff] %v1963_v24  ;;  %v1788_v0 = vsub.f32 %v3540_v17, %v1751_v62 }
 0x4f7   : > { %v3656_v55 = vpop.eup %2634  ;;  %v1846_v11 = vmul.f32 1.442695, %v1788_v0 }
 0x4f8   : > { %1908 = vadd.xlane.f32.xlu0 %v3656_v55 }
 0x4f9   : > { %2638 = vpow2.f32 %v1846_v11 }
 0x4fa   : > { %v2637_v60 = vpop.eup %2636 }
 0x4fb   : > { %v1964_v47 = vmul.f32 %v2637_v60, %v3535_v16 }
 0x4fc   : > { %v1753_v45 = vpop.xlane.xlu0 %1752 }
 0x4fd   : > { %1996 = vst [vmem:[%s3592_s5 + $0x50] sm:$0xff] %v1964_v47  ;;  %v1789_v21 = vsub.f32 %v3546_v53, %v1753_v45 }
 0x4ff   : > { %v3662_v9 = vpop.eup %2638  ;;  %v1848_v14 = vmul.f32 1.442695, %v1789_v21 }
 0x500   : > { %1910 = vadd.xlane.f32.xlu1 %v3662_v9 }
 0x501   : > { %2640 = vpow2.f32 %v1848_v14 }
 0x504   : > { %v1755_v17 = vpop.xlane.xlu1 %1754 }
 0x505   : > { %v1790_v51 = vsub.f32 %v3552_v56, %v1755_v17 }
 0x507   : > { %v3666_v40 = vpop.eup %2640  ;;  %v1850_v37 = vmul.f32 1.442695, %v1790_v51 }
 0x508   : > { %1912 = vadd.xlane.f32.xlu2 %v3666_v40 }
 0x509   : > { %2642 = vpow2.f32 %v1850_v37 }
 0x50c   : > { %v1757_v16 = vpop.xlane.xlu2 %1756 }
 0x50d   : > { %v1791_v58 = vsub.f32 %v3559_v42, %v1757_v16 }
 0x50f   : > { %v3670_v20 = vpop.eup %2642  ;;  %v1852_v53 = vmul.f32 1.442695, %v1791_v58 }
 0x510   : > { %1914 = vadd.xlane.f32.xlu0 %v3670_v20 }
 0x511   : > { %2644 = vpow2.f32 %v1852_v53 }
 0x514   : > { %v1883_v18 = vpop.xlane.xlu2 %1882  ;;  %v1759_v31 = vpop.xlane.xlu0 %1758 }
 0x515   : > { %2646 = vrcp.f32 %v1883_v18  ;;  %v1792_v56 = vsub.f32 %v3569_v54, %v1759_v31 }
 0x517   : > { %v3674_v5 = vpop.eup %2644  ;;  %v1854_v2 = vmul.f32 1.442695, %v1792_v56 }
 0x518   : > { %1916 = vadd.xlane.f32.xlu1 %v3674_v5 }
 0x519   : > { %2648 = vpow2.f32 %v1854_v2 }
 0x51b   : > { %v2647_v38 = vpop.eup %2646 }
 0x51c   : > { %v1966_v42 = vmul.f32 %v2647_v38, %v3565_v63  ;;  %v1761_v28 = vpop.xlane.xlu1 %1760  ;;  %v1885_v46 = vpop.xlane.xlu0 %1884 }
 0x51d   : > { %v1793_v3 = vsub.f32 %v3585_v25, %v1761_v28  ;;  %v1889_v12 = vpop.xlane.xlu2 %1888  ;;  %2650 = vrcp.f32 %v1885_v46 }
 0x51e   : > { %1998 = vst [vmem:[%s3592_s5 + $0x60] sm:$0xff] %v1966_v42  ;;  %2652 = vrcp.f32 %v1889_v12 }
 0x51f   : > { %v3680_v54 = vpop.eup %2648  ;;  %v1856_v10 = vmul.f32 1.442695, %v1793_v3 }
 0x520   : > { %1918 = vadd.xlane.f32.xlu2 %v3680_v54 }
 0x521   : > { %2654 = vpow2.f32 %v1856_v10 }
 0x523   : > { %v2651_v13 = vpop.eup %2650 }
 0x524   : > { %v2653_v36 = vpop.eup %2652  ;;  %v1967_v63 = vmul.f32 %v2651_v13, %v3581_v7  ;;  %v1881_v26 = vpop.xlane.xlu1 %1880 }
 0x525   : > { %v1891_v25 = vpop.xlane.xlu0 %1890  ;;  %v1969_v48 = vmul.f32 %v2653_v36, %v3577_v23  ;;  %2656 = vrcp.f32 %v1881_v26 }
 0x526   : > { %1999 = vst [vmem:[%s3592_s5 + $0x68] sm:$0xff] %v1967_v63  ;;  %2658 = vrcp.f32 %v1891_v25 }
 0x527   : > { %v3686_v19 = vpop.eup %2654  ;;  %2001 = vst [vmem:[%s3592_s5 + $0x78] sm:$0xff] %v1969_v48 }
 0x528   : > { %1920 = vadd.xlane.f32.xlu0 %v3686_v19 }
 0x52b   : > { %v2657_v39 = vpop.eup %2656 }
 0x52c   : > { %v2659_v22 = vpop.eup %2658  ;;  %v1965_v44 = vmul.f32 %v2657_v39, %v3597_v35  ;;  %v1887_v7 = vpop.xlane.xlu1 %1886 }
 0x52d   : > { %v1970_v27 = vmul.f32 %v2659_v22, %v3595_v30  ;;  %2660 = vrcp.f32 %v1887_v7 }
 0x52e   : > { %1997 = vst [vmem:[%s3592_s5 + $0x58] sm:$0xff] %v1965_v44 }
 0x52f   : > { %2002 = vst [vmem:[%s3592_s5 + $0x80] sm:$0xff] %v1970_v27 }
 0x533   : > { %v2661_v23 = vpop.eup %2660  ;;  %v1895_v57 = vpop.xlane.xlu2 %1894 }
 0x534   : > { %v1968_v29 = vmul.f32 %v2661_v23, %v3605_v33  ;;  %2662 = vrcp.f32 %v1895_v57  ;;  %v1893_v32 = vpop.xlane.xlu1 %1892 }
 0x535   : > { %2664 = vrcp.f32 %v1893_v32 }
 0x536   : > { %2000 = vst [vmem:[%s3592_s5 + $0x70] sm:$0xff] %v1968_v29 }
 0x53a   : > { %v2663_v34 = vpop.eup %2662 }
 0x53b   : > { %v2665_v52 = vpop.eup %2664  ;;  %v1972_v35 = vmul.f32 %v2663_v34, %v3611_v1  ;;  %v1897_v30 = vpop.xlane.xlu0 %1896 }
 0x53c   : > { %v1971_v49 = vmul.f32 %v2665_v52, %v3613_v43  ;;  %2666 = vrcp.f32 %v1897_v30 }
 0x53d   : > { %2004 = vst [vmem:[%s3592_s5 + $0x90] sm:$0xff] %v1972_v35 }
 0x53e   : > { %2003 = vst [vmem:[%s3592_s5 + $0x88] sm:$0xff] %v1971_v49 }
 0x542   : > { %v2667_v4 = vpop.eup %2666 }
 0x543   : > { %v1973_v33 = vmul.f32 %v2667_v4, %v3620_v50  ;;  %v1899_v24 = vpop.xlane.xlu1 %1898 }
 0x544   : > { %2668 = vrcp.f32 %v1899_v24 }
 0x545   : > { %2005 = vst [vmem:[%s3592_s5 + $0x98] sm:$0xff] %v1973_v33 }
 0x54a   : > { %v2669_v8 = vpop.eup %2668 }
 0x54b   : > { %v1974_v62 = vmul.f32 %v2669_v8, %v3626_v59  ;;  %v1901_v0 = vpop.xlane.xlu2 %1900 }
 0x54c   : > { %2670 = vrcp.f32 %v1901_v0 }
 0x54d   : > { %2006 = vst [vmem:[%s3592_s5 + $0xa0] sm:$0xff] %v1974_v62 }
 0x552   : > { %v2671_v1 = vpop.eup %2670 }
 0x553   : > { %v1975_v43 = vmul.f32 %v2671_v1, %v3632_v61  ;;  %v1903_v11 = vpop.xlane.xlu0 %1902 }
 0x554   : > { %2672 = vrcp.f32 %v1903_v11 }
 0x555   : > { %2007 = vst [vmem:[%s3592_s5 + $0xa8] sm:$0xff] %v1975_v43 }
 0x55a   : > { %v2673_v60 = vpop.eup %2672 }
 0x55b   : > { %v1976_v50 = vmul.f32 %v2673_v60, %v3638_v15  ;;  %v1905_v47 = vpop.xlane.xlu1 %1904 }
 0x55c   : > { %2674 = vrcp.f32 %v1905_v47 }
 0x55d   : > { %2008 = vst [vmem:[%s3592_s5 + $0xb0] sm:$0xff] %v1976_v50 }
 0x562   : > { %v2675_v45 = vpop.eup %2674 }
 0x563   : > { %v1977_v59 = vmul.f32 %v2675_v45, %v3644_v41  ;;  %v1907_v21 = vpop.xlane.xlu2 %1906 }
 0x564   : > { %2676 = vrcp.f32 %v1907_v21 }
 0x565   : > { %2009 = vst [vmem:[%s3592_s5 + $0xb8] sm:$0xff] %v1977_v59 }
 0x56a   : > { %v2677_v14 = vpop.eup %2676 }
 0x56b   : > { %v1978_v61 = vmul.f32 %v2677_v14, %v3650_v6  ;;  %v1909_v17 = vpop.xlane.xlu0 %1908 }
 0x56c   : > { %2678 = vrcp.f32 %v1909_v17 }
 0x56d   : > { %2010 = vst [vmem:[%s3592_s5 + $0xc0] sm:$0xff] %v1978_v61 }
 0x572   : > { %v2679_v51 = vpop.eup %2678 }
 0x573   : > { %v1979_v15 = vmul.f32 %v2679_v51, %v3656_v55  ;;  %v1911_v37 = vpop.xlane.xlu1 %1910 }
 0x574   : > { %2680 = vrcp.f32 %v1911_v37 }
 0x575   : > { %2011 = vst [vmem:[%s3592_s5 + $0xc8] sm:$0xff] %v1979_v15 }
 0x57a   : > { %v2681_v16 = vpop.eup %2680 }
 0x57b   : > { %v1980_v41 = vmul.f32 %v2681_v16, %v3662_v9  ;;  %v1913_v58 = vpop.xlane.xlu2 %1912 }
 0x57c   : > { %2682 = vrcp.f32 %v1913_v58 }
 0x57d   : > { %2012 = vst [vmem:[%s3592_s5 + $0xd0] sm:$0xff] %v1980_v41 }
 0x582   : > { %v2683_v6 = vpop.eup %2682 }
 0x583   : > { %v1981_v53 = vmul.f32 %v2683_v6, %v3666_v40  ;;  %v1915_v18 = vpop.xlane.xlu0 %1914 }
 0x584   : > { %2684 = vrcp.f32 %v1915_v18 }
 0x585   : > { %2013 = vst [vmem:[%s3592_s5 + $0xd8] sm:$0xff] %v1981_v53 }
 0x58a   : > { %v2685_v31 = vpop.eup %2684 }
 0x58b   : > { %v1982_v55 = vmul.f32 %v2685_v31, %v3670_v20  ;;  %v1917_v56 = vpop.xlane.xlu1 %1916 }
 0x58c   : > { %2686 = vrcp.f32 %v1917_v56 }
 0x58d   : > { %2014 = vst [vmem:[%s3592_s5 + $0xe0] sm:$0xff] %v1982_v55 }
 0x592   : > { %v2687_v9 = vpop.eup %2686 }
 0x593   : > { %v1983_v2 = vmul.f32 %v2687_v9, %v3674_v5  ;;  %v1919_v38 = vpop.xlane.xlu2 %1918 }
 0x594   : > { %2688 = vrcp.f32 %v1919_v38 }
 0x595   : > { %2015 = vst [vmem:[%s3592_s5 + $0xe8] sm:$0xff] %v1983_v2 }
 0x59a   : > { %v2689_v40 = vpop.eup %2688 }
 0x59b   : > { %v1984_v42 = vmul.f32 %v2689_v40, %v3680_v54  ;;  %v1921_v28 = vpop.xlane.xlu0 %1920 }
 0x59c   : > { %2690 = vrcp.f32 %v1921_v28 }
 0x59d   : > { %2016 = vst [vmem:[%s3592_s5 + $0xf0] sm:$0xff] %v1984_v42 }
 0x5a2   : > { %v2691_v20 = vpop.eup %2690 }
 0x5a3   : > { %v1985_v5 = vmul.f32 %v2691_v20, %v3686_v19 }
 0x5a5   : > { %2017 = vst [vmem:[%s3592_s5 + $0xf8] sm:$0xff] %v1985_v5 }
 0x5a6   : > { %2719 = shalt.err (!%p2716_p3)
}
 0x5a7   : > { %s2756_s28 = smov 128   ;;  %s2757_s29 = smov 8  }
 0x5a8   : > { %2517 = dma.vmem_to_hbm [thread:$0]  (%p2821_p5), %s2032_s11, 4096, %s2034_s13, %s2019_s19, %s2756_s28, %s2756_s28, %s2757_s29  }
 0x5a9 PF: > { %p2523_p4 = scmp.ge.s32.totalorder %s2754_s18, 2  ;;  %s2048_s30 = sand.u32 1, %s2742_s15  }
 0x5aa   : > { %s2049_s5 = scalar_lea.sflag [#allocation3], %s2048_s30 }
 0x5ab   : > { %p2520_p7 = pnand %p2523_p4, %p2825_p6 }
 0x5ad   : > { %p2521_p8 = pneg %p2520_p7 }
 0x5af   : > { %2737 = dma.done.wait (%p2521_p8), %s2049_s5, 4096  }
 0x5b0   : > { %2739 = vsyncadd (%p2521_p8), %s2049_s5, 4294963200  ;;  %p14_p9 = scmp.ge.s32.totalorder %s2808_s21, 4   ;;  %s3767_s15 = smov %s2746_s16 }
 0x5b1   : > { %s3768_s16 = smov %s2750_s17  ;;  %s3769_s17 = smov %s2819_s24 }
 0x5b2   : > { %s3770_s18 = smov %s2808_s21  ;;  %16 = sbr.rel (!%p14_p9) target bundleno = 3 (0x3), region = 84 }
 0x5b7   :  { %2055 = vsyncpa [#allocation3], 1 }
 0x5b8   :  { %2057 = vsyncpa [#allocation3 + $0x1], 1 }

</bundles_post_ra>
